<compile_context>
chip_gen: v7x
topology: tpu7x:2x2x1
jax: 0.10.0
libtpu: 0.0.40
codegen_flags: <defaults>
</compile_context>

<pallas_src>
import functools
import numpy as np
import jax
import jax.numpy as jnp
from jax.experimental import pallas as pl
from jax.experimental.pallas import tpu as pltpu


# ----------------------------------------------------------------------------
# Fused kernel: Conv1d(1->2,k=3,pad=1) + ReLU + MaxPool1d(2)  ->  BiLSTM(output[-1])
#
#   xe_ref / xo_ref       : (R, I)  even / odd window samples, tiled x2 along lanes (channel-major)
#   xor_ref / xel_ref     : (R, I)  x[2j-1] / x[2j+2] shifted operands (built in the wrapper)
#   taps_ref              : (4, I)  conv taps broadcast per-channel: rows [w0 | w1 | w2 | bias]
#   wihf_ref / wihb_ref   : (I, 4H) W_ih fwd / reverse, gate order [i, f, o, g], g-cols pre-scaled x2
#   whh_ref               : (H, 4H) W_hh fwd, same layout / pre-scaling
#   bf_ref / bb_ref       : (1, 4H) combined (ih+hh) biases, g-cols pre-scaled x2
#   o_ref                 : (Np, OW) lane-dense output [h_fwd(T-1) | h_bwd(T-1) | zeros]
#   (rows are time-major: r = t*Np + n)
# ----------------------------------------------------------------------------
def encode_kernel(xe_ref, xo_ref, xor_ref, xel_ref, taps_ref,
                  wihf_ref, wihb_ref, whh_ref, bf_ref, bb_ref,
                  o_ref, *, T, Np, H, OW):
    taps = taps_ref[...]                 # (4, I)
    w0 = taps[0:1, :]
    w1 = taps[1:2, :]
    w2 = taps[2:3, :]
    cb = taps[3:4, :]

    xe = xe_ref[...]                     # x[2j]      (R, I)
    xo = xo_ref[...]                     # x[2j+1]
    xm = xor_ref[...]                    # x[2j-1]
    xp = xel_ref[...]                    # x[2j+2]

    # Conv(k=3,pad=1) + ReLU + MaxPool(2), both channels lane-parallel, no concat / channel loop.
    y_even = w0 * xm + w1 * xe + w2 * xo + cb        # conv output at positions 2j
    y_odd = w0 * xe + w1 * xo + w2 * xp + cb         # conv output at positions 2j+1
    feats = jnp.maximum(jnp.maximum(y_even, y_odd), 0.0)   # (R, I) channel-major pooled features

    # Hoisted input projections, kept as values (vreg-resident; no VMEM scratch).
    gx_f = (jnp.dot(feats, wihf_ref[...], preferred_element_type=jnp.float32)
            + bf_ref[...])                                  # (R, 4H) all timesteps, forward dir
    feats_last = feats[(T - 1) * Np:T * Np, :]
    gx_b = (jnp.dot(feats_last, wihb_ref[...], preferred_element_type=jnp.float32)
            + bb_ref[...])                                  # (Np, 4H) last timestep only, reverse dir

    # Forward recurrence: statically unrolled, h/c live in vregs.
    whh = whh_ref[...]                                      # (H, 4H)
    h = jnp.zeros((Np, H), jnp.float32)
    c = jnp.zeros((Np, H), jnp.float32)
    H2, H3 = 2 * H, 3 * H
    for t in range(T):
        g = gx_f[t * Np:(t + 1) * Np, :] + jnp.dot(
            h, whh, preferred_element_type=jnp.float32)     # (Np, 4H)
        s = jax.nn.sigmoid(g)                               # ONE EUP pass over all 4H=128 lanes
        gg = 2.0 * s[:, H3:] - 1.0                          # tanh(x) = 2*sigmoid(2x)-1 (g-cols pre-scaled)
        c = s[:, H:H2] * c + s[:, :H] * gg                  # f*c + i*g
        h = s[:, H2:H3] * jnp.tanh(c)                       # o*tanh(c)

    # Backward direction, output[-1]: one step on x[T-1] from zero state (W_hh_rev @ 0 == 0).
    sb = jax.nn.sigmoid(gx_b)
    ggb = 2.0 * sb[:, H3:] - 1.0
    h_b = sb[:, H2:H3] * jnp.tanh(sb[:, :H] * ggb)

    # Lane-dense writeback: one unmasked 128-lane store.
    pieces = [h, h_b]
    if OW > 2 * H:
        pieces.append(jnp.zeros((Np, OW - 2 * H), jnp.float32))
    o_ref[...] = jnp.concatenate(pieces, axis=1)


# ----------------------------------------------------------------------------
# EncodeNet.forward wrapper (layout plumbing only; all math is in the kernel)
# ----------------------------------------------------------------------------
def encode_net_forward(x, params, time_lens, hidden_size):
    B, C, L = x.shape
    T = time_lens
    H = hidden_size
    Wd = L // T                          # window_size
    Wp = Wd // 2                         # pooled length per channel
    I = 2 * Wp                           # _adaptive_feature_size()
    N = B * C
    Np = ((N + 7) // 8) * 8              # pad batch rows to a sublane multiple (aligned slices)
    R = T * Np

    # chunk + stack == reshape (N, T, Wd); time-major rows, pad batch, split even/odd samples,
    # build the +/-1 shifted operands and tile x2 along lanes (channel-major). Pure layout plumbing.
    xw = x.reshape(N, T, Wd).transpose(1, 0, 2)             # (T, N, Wd)
    xw = jnp.pad(xw, ((0, 0), (0, Np - N), (0, 0)))         # (T, Np, Wd) — pad rows stay finite
    xw = xw.reshape(R, Wp, 2)
    xe = xw[:, :, 0]                                        # x[2j]
    xo = xw[:, :, 1]                                        # x[2j+1]
    zcol = jnp.zeros((R, 1), jnp.float32)
    xo_rsh = jnp.concatenate([zcol, xo[:, :-1]], axis=1)    # x[2j-1] (zero padded)
    xe_lsh = jnp.concatenate([xe[:, 1:], zcol], axis=1)     # x[2j+2] (zero padded)
    tile2 = lambda a: jnp.tile(a, (1, 2))                   # duplicate along lanes for 2 channels
    xe_t, xo_t = tile2(xe), tile2(xo)
    xor_t, xel_t = tile2(xo_rsh), tile2(xe_lsh)

    # Conv taps broadcast to per-channel (1, I) rows, stacked into one (4, I) VMEM array.
    cw, cb = params["conv_w"], params["conv_b"]             # (2, 3), (2,)
    taps = jnp.stack([jnp.repeat(cw[:, 0], Wp),
                      jnp.repeat(cw[:, 1], Wp),
                      jnp.repeat(cw[:, 2], Wp),
                      jnp.repeat(cb, Wp)], axis=0)          # (4, I) rows [w0 | w1 | w2 | bias]

    # Pre-scale the g-gate (tanh) columns by 2 so the kernel can use one sigmoid over all 4H lanes
    # and recover tanh(x) = 2*sigmoid(2x) - 1.  Zero runtime cost (wrapper-side, tiny arrays).
    def gscale(w):
        return w.at[..., 3 * H:4 * H].multiply(2.0)
    wih_f = gscale(params["wih_f"])
    wih_b = gscale(params["wih_b"])
    whh_f = gscale(params["whh_f"])
    b_f = gscale(params["b_f"])[None, :]                    # (1, 4H)
    b_b = gscale(params["b_b"])[None, :]                    # (1, 4H)

    OW = max(128, ((2 * H + 127) // 128) * 128)             # lane-dense output width

    kernel = functools.partial(encode_kernel, T=T, Np=Np, H=H, OW=OW)
    out = pl.pallas_call(
        kernel,
        grid=(1,),
        in_specs=[
            pl.BlockSpec((R, I), lambda i: (0, 0)),
            pl.BlockSpec((R, I), lambda i: (0, 0)),
            pl.BlockSpec((R, I), lambda i: (0, 0)),
            pl.BlockSpec((R, I), lambda i: (0, 0)),
            pl.BlockSpec((4, I), lambda i: (0, 0)),
            pl.BlockSpec((I, 4 * H), lambda i: (0, 0)),
            pl.BlockSpec((I, 4 * H), lambda i: (0, 0)),
            pl.BlockSpec((H, 4 * H), lambda i: (0, 0)),
            pl.BlockSpec((1, 4 * H), lambda i: (0, 0)),
            pl.BlockSpec((1, 4 * H), lambda i: (0, 0)),
        ],
        out_specs=pl.BlockSpec((Np, OW), lambda i: (0, 0)),
        out_shape=jax.ShapeDtypeStruct((Np, OW), jnp.float32),
        compiler_params=pltpu.CompilerParams(dimension_semantics=("arbitrary",)),
    )(xe_t, xo_t, xor_t, xel_t, taps, wih_f, wih_b, whh_f, b_f, b_b)
    # TODO(synk): if B*C becomes large, add a leading "parallel" grid axis over batch-row blocks
    # (v7x second TensorCore) while keeping the T-loop inside the body; on v5e/v6e keep grid=(1,).
    return out[:N, :2 * H].reshape(B, C, 2 * H)


# ----------------------------------------------------------------------------
# Pure-JAX reference (same math, same [i, f, o, g] gate layout, UN-scaled params)
# ----------------------------------------------------------------------------
def reference_forward(x, params, time_lens, hidden_size):
    B, C, L = x.shape
    T = time_lens
    H = hidden_size
    Wd = L // T
    cw, cb = params["conv_w"], params["conv_b"]
    xs = x.reshape(B * C * T, Wd)
    xpad = jnp.pad(xs, ((0, 0), (1, 1)))
    chans = []
    for oc in range(2):
        y = (cw[oc, 0] * xpad[:, 0:Wd] + cw[oc, 1] * xpad[:, 1:Wd + 1]
             + cw[oc, 2] * xpad[:, 2:Wd + 2] + cb[oc])
        y = jnp.maximum(y, 0.0)
        chans.append(jnp.maximum(y[:, 0::2], y[:, 1::2]))
    feats = jnp.concatenate(chans, axis=1)                  # (B*C*T, 2*(Wd//2)) channel-major
    I = feats.shape[1]
    seq = feats.reshape(B * C, T, I).transpose(1, 0, 2)     # (T, N, I)
    N = B * C

    def cell(x_t, h, c, wih, whh, b):
        g = x_t @ wih + h @ whh + b
        i = jax.nn.sigmoid(g[:, :H])
        f = jax.nn.sigmoid(g[:, H:2 * H])
        o = jax.nn.sigmoid(g[:, 2 * H:3 * H])
        gg = jnp.tanh(g[:, 3 * H:])
        c = f * c + i * gg
        return o * jnp.tanh(c), c

    h = jnp.zeros((N, H), jnp.float32)
    c = jnp.zeros((N, H), jnp.float32)
    for t in range(T):
        h, c = cell(seq[t], h, c, params["wih_f"], params["whh_f"], params["b_f"])
    hb, _ = cell(seq[T - 1], jnp.zeros((N, H)), jnp.zeros((N, H)),
                 params["wih_b"], jnp.zeros((H, 4 * H), jnp.float32), params["b_b"])
    return jnp.concatenate([h, hb], axis=1).reshape(B, C, 2 * H)


# ----------------------------------------------------------------------------
def init_params(key, input_size, hidden):
    # Gate order in all 4H-wide weights/biases is [i, f, o, g].
    # Converting real PyTorch LSTM weights requires permuting its [i, f, g, o] blocks accordingly
    # (and transposing); the wrapper then applies the x2 g-gate pre-scaling itself.
    ks = jax.random.split(key, 9)

    def u(k, shape, scale):
        return jax.random.uniform(k, shape, jnp.float32, -scale, scale)

    s = 1.0 / float(np.sqrt(hidden))
    return dict(
        conv_w=u(ks[0], (2, 3), 0.5),                                   # Conv1d(1,2,3) weight (in-dim squeezed)
        conv_b=u(ks[1], (2,), 0.5),
        wih_f=u(ks[2], (input_size, 4 * hidden), s),                    # weight_ih_l0.T (regrouped)
        whh_f=u(ks[3], (hidden, 4 * hidden), s),                        # weight_hh_l0.T (regrouped)
        b_f=u(ks[4], (4 * hidden,), s) + u(ks[5], (4 * hidden,), s),    # bias_ih + bias_hh
        wih_b=u(ks[6], (input_size, 4 * hidden), s),                    # weight_ih_l0_reverse.T
        b_b=u(ks[7], (4 * hidden,), s) + u(ks[8], (4 * hidden,), s),    # reverse biases combined
    )


if __name__ == "__main__":
    # Small shapes consistent with EncodeNet(in_channel=3, sequence_lens, time_lens, hidden_size)
    B, C = 2, 3
    SEQ_LENS, TIME_LENS, HIDDEN = 80, 10, 32
    WINDOW = SEQ_LENS // TIME_LENS                 # 8
    INPUT_SIZE = 2 * (WINDOW // 2)                 # _adaptive_feature_size(): 2 channels * pooled length

    key = jax.random.PRNGKey(0)
    kx, kp = jax.random.split(key)
    x = jax.random.normal(kx, (B, C, SEQ_LENS), jnp.float32)
    params = init_params(kp, INPUT_SIZE, HIDDEN)

    out = encode_net_forward(x, params, TIME_LENS, HIDDEN)
    out = jax.block_until_ready(out)
    assert out.shape == (B, C, 2 * HIDDEN), out.shape

    ref = jax.block_until_ready(reference_forward(x, params, TIME_LENS, HIDDEN))
    np.testing.assert_allclose(np.asarray(out), np.asarray(ref), rtol=2e-2, atol=2e-2)

    print("KERNEL_OK")
</pallas_src>

<mosaic_0001>
module attributes {stable_mosaic.version = 11 : i64} {
  func.func @encode_kernel(%arg0: i32, %arg1: memref<80x8xf32, #tpu.memory_space<vmem>>, %arg2: memref<80x8xf32, #tpu.memory_space<vmem>>, %arg3: memref<80x8xf32, #tpu.memory_space<vmem>>, %arg4: memref<80x8xf32, #tpu.memory_space<vmem>>, %arg5: memref<4x8xf32, #tpu.memory_space<vmem>>, %arg6: memref<8x128xf32, #tpu.memory_space<vmem>>, %arg7: memref<8x128xf32, #tpu.memory_space<vmem>>, %arg8: memref<32x128xf32, #tpu.memory_space<vmem>>, %arg9: memref<1x128xf32, #tpu.memory_space<vmem>>, %arg10: memref<1x128xf32, #tpu.memory_space<vmem>>, %arg11: memref<8x128xf32, #tpu.memory_space<vmem>>) attributes {dimension_semantics = [#tpu.dimension_semantics<arbitrary>], iteration_bounds = array<i64: 1>, scalar_prefetch = 0 : i64, scratch_operands = 0 : i64, tpu.core_type = #tpu.core_type<tc>, window_params = [{pipeline_mode = #tpu.pipeline_mode<synchronous>, transform_indices = @transform_0, window_bounds = array<i64: 80, 8>}, {pipeline_mode = #tpu.pipeline_mode<synchronous>, transform_indices = @transform_1, window_bounds = array<i64: 80, 8>}, {pipeline_mode = #tpu.pipeline_mode<synchronous>, transform_indices = @transform_2, window_bounds = array<i64: 80, 8>}, {pipeline_mode = #tpu.pipeline_mode<synchronous>, transform_indices = @transform_3, window_bounds = array<i64: 80, 8>}, {pipeline_mode = #tpu.pipeline_mode<synchronous>, transform_indices = @transform_4, window_bounds = array<i64: 4, 8>}, {pipeline_mode = #tpu.pipeline_mode<synchronous>, transform_indices = @transform_5, window_bounds = array<i64: 8, 128>}, {pipeline_mode = #tpu.pipeline_mode<synchronous>, transform_indices = @transform_6, window_bounds = array<i64: 8, 128>}, {pipeline_mode = #tpu.pipeline_mode<synchronous>, transform_indices = @transform_7, window_bounds = array<i64: 32, 128>}, {pipeline_mode = #tpu.pipeline_mode<synchronous>, transform_indices = @transform_8, window_bounds = array<i64: 1, 128>}, {pipeline_mode = #tpu.pipeline_mode<synchronous>, transform_indices = @transform_9, window_bounds = array<i64: 1, 128>}, {pipeline_mode = #tpu.pipeline_mode<synchronous>, transform_indices = @transform_10, window_bounds = array<i64: 8, 128>}]} {
    %c0 = arith.constant 0 : index
    %c0_0 = arith.constant 0 : index
    %0 = vector.load %arg5[%c0, %c0_0] : memref<4x8xf32, #tpu.memory_space<vmem>>, vector<4x8xf32>
    %1 = vector.extract_strided_slice %0 {offsets = [0, 0], sizes = [1, 8], strides = [1, 1]} : vector<4x8xf32> to vector<1x8xf32>
    %2 = vector.extract_strided_slice %0 {offsets = [1, 0], sizes = [1, 8], strides = [1, 1]} : vector<4x8xf32> to vector<1x8xf32>
    %3 = vector.extract_strided_slice %0 {offsets = [2, 0], sizes = [1, 8], strides = [1, 1]} : vector<4x8xf32> to vector<1x8xf32>
    %4 = vector.extract_strided_slice %0 {offsets = [3, 0], sizes = [1, 8], strides = [1, 1]} : vector<4x8xf32> to vector<1x8xf32>
    %c0_1 = arith.constant 0 : index
    %c0_2 = arith.constant 0 : index
    %5 = vector.load %arg1[%c0_1, %c0_2] : memref<80x8xf32, #tpu.memory_space<vmem>>, vector<80x8xf32>
    %c0_3 = arith.constant 0 : index
    %c0_4 = arith.constant 0 : index
    %6 = vector.load %arg2[%c0_3, %c0_4] : memref<80x8xf32, #tpu.memory_space<vmem>>, vector<80x8xf32>
    %c0_5 = arith.constant 0 : index
    %c0_6 = arith.constant 0 : index
    %7 = vector.load %arg3[%c0_5, %c0_6] : memref<80x8xf32, #tpu.memory_space<vmem>>, vector<80x8xf32>
    %c0_7 = arith.constant 0 : index
    %c0_8 = arith.constant 0 : index
    %8 = vector.load %arg4[%c0_7, %c0_8] : memref<80x8xf32, #tpu.memory_space<vmem>>, vector<80x8xf32>
    %9 = vector.broadcast %1 : vector<1x8xf32> to vector<80x8xf32>
    %10 = arith.mulf %9, %7 : vector<80x8xf32>
    %11 = vector.broadcast %2 : vector<1x8xf32> to vector<80x8xf32>
    %12 = arith.mulf %11, %5 : vector<80x8xf32>
    %13 = arith.addf %10, %12 : vector<80x8xf32>
    %14 = vector.broadcast %3 : vector<1x8xf32> to vector<80x8xf32>
    %15 = arith.mulf %14, %6 : vector<80x8xf32>
    %16 = arith.addf %13, %15 : vector<80x8xf32>
    %17 = vector.broadcast %4 : vector<1x8xf32> to vector<80x8xf32>
    %18 = arith.addf %16, %17 : vector<80x8xf32>
    %19 = vector.broadcast %1 : vector<1x8xf32> to vector<80x8xf32>
    %20 = arith.mulf %19, %5 : vector<80x8xf32>
    %21 = vector.broadcast %2 : vector<1x8xf32> to vector<80x8xf32>
    %22 = arith.mulf %21, %6 : vector<80x8xf32>
    %23 = arith.addf %20, %22 : vector<80x8xf32>
    %24 = vector.broadcast %3 : vector<1x8xf32> to vector<80x8xf32>
    %25 = arith.mulf %24, %8 : vector<80x8xf32>
    %26 = arith.addf %23, %25 : vector<80x8xf32>
    %27 = vector.broadcast %4 : vector<1x8xf32> to vector<80x8xf32>
    %28 = arith.addf %26, %27 : vector<80x8xf32>
    %29 = arith.maximumf %18, %28 : vector<80x8xf32>
    %cst = arith.constant 0.000000e+00 : f32
    %30 = vector.broadcast %cst : f32 to vector<80x8xf32>
    %31 = arith.maximumf %29, %30 : vector<80x8xf32>
    %c0_9 = arith.constant 0 : index
    %c0_10 = arith.constant 0 : index
    %32 = vector.load %arg6[%c0_9, %c0_10] : memref<8x128xf32, #tpu.memory_space<vmem>>, vector<8x128xf32>
    %cst_11 = arith.constant dense<0.000000e+00> : vector<80x128xf32>
    %33 = tpu.matmul %31, %32, %cst_11 {dimension_numbers = #tpu.dot_dimension_numbers<[1], [0], [0], [1], [0, 0, 1, 1], [], []>} : vector<80x8xf32>, vector<8x128xf32>, vector<80x128xf32> -> vector<80x128xf32>
    %c0_12 = arith.constant 0 : index
    %c0_13 = arith.constant 0 : index
    %34 = vector.load %arg9[%c0_12, %c0_13] : memref<1x128xf32, #tpu.memory_space<vmem>>, vector<1x128xf32>
    %35 = vector.broadcast %34 : vector<1x128xf32> to vector<80x128xf32>
    %36 = arith.addf %33, %35 : vector<80x128xf32>
    %37 = vector.extract_strided_slice %31 {offsets = [72, 0], sizes = [8, 8], strides = [1, 1]} : vector<80x8xf32> to vector<8x8xf32>
    %c0_14 = arith.constant 0 : index
    %c0_15 = arith.constant 0 : index
    %38 = vector.load %arg7[%c0_14, %c0_15] : memref<8x128xf32, #tpu.memory_space<vmem>>, vector<8x128xf32>
    %cst_16 = arith.constant dense<0.000000e+00> : vector<8x128xf32>
    %39 = tpu.matmul %37, %38, %cst_16 {dimension_numbers = #tpu.dot_dimension_numbers<[1], [0], [0], [1], [0, 0, 1, 1], [], []>} : vector<8x8xf32>, vector<8x128xf32>, vector<8x128xf32> -> vector<8x128xf32>
    %c0_17 = arith.constant 0 : index
    %c0_18 = arith.constant 0 : index
    %40 = vector.load %arg10[%c0_17, %c0_18] : memref<1x128xf32, #tpu.memory_space<vmem>>, vector<1x128xf32>
    %41 = vector.broadcast %40 : vector<1x128xf32> to vector<8x128xf32>
    %42 = arith.addf %39, %41 : vector<8x128xf32>
    %c0_19 = arith.constant 0 : index
    %c0_20 = arith.constant 0 : index
    %43 = vector.load %arg8[%c0_19, %c0_20] : memref<32x128xf32, #tpu.memory_space<vmem>>, vector<32x128xf32>
    %cst_21 = arith.constant 0.000000e+00 : f32
    %44 = vector.broadcast %cst_21 : f32 to vector<8x32xf32>
    %cst_22 = arith.constant 0.000000e+00 : f32
    %45 = vector.broadcast %cst_22 : f32 to vector<8x32xf32>
    %46 = vector.extract_strided_slice %36 {offsets = [0, 0], sizes = [8, 128], strides = [1, 1]} : vector<80x128xf32> to vector<8x128xf32>
    %cst_23 = arith.constant dense<0.000000e+00> : vector<8x128xf32>
    %47 = tpu.matmul %44, %43, %cst_23 {dimension_numbers = #tpu.dot_dimension_numbers<[1], [0], [0], [1], [0, 0, 1, 1], [], []>} : vector<8x32xf32>, vector<32x128xf32>, vector<8x128xf32> -> vector<8x128xf32>
    %48 = arith.addf %46, %47 : vector<8x128xf32>
    %49 = arith.negf %48 : vector<8x128xf32>
    %50 = math.exp %49 : vector<8x128xf32>
    %cst_24 = arith.constant 1.000000e+00 : f32
    %51 = vector.broadcast %cst_24 : f32 to vector<8x128xf32>
    %52 = arith.addf %51, %50 : vector<8x128xf32>
    %53 = arith.divf %51, %52 : vector<8x128xf32>
    %54 = vector.extract_strided_slice %53 {offsets = [0, 96], sizes = [8, 32], strides = [1, 1]} : vector<8x128xf32> to vector<8x32xf32>
    %cst_25 = arith.constant 2.000000e+00 : f32
    %55 = vector.broadcast %cst_25 : f32 to vector<8x32xf32>
    %56 = arith.mulf %55, %54 : vector<8x32xf32>
    %cst_26 = arith.constant 1.000000e+00 : f32
    %57 = vector.broadcast %cst_26 : f32 to vector<8x32xf32>
    %58 = arith.subf %56, %57 : vector<8x32xf32>
    %59 = vector.extract_strided_slice %53 {offsets = [0, 32], sizes = [8, 32], strides = [1, 1]} : vector<8x128xf32> to vector<8x32xf32>
    %60 = arith.mulf %59, %45 : vector<8x32xf32>
    %61 = vector.extract_strided_slice %53 {offsets = [0, 0], sizes = [8, 32], strides = [1, 1]} : vector<8x128xf32> to vector<8x32xf32>
    %62 = arith.mulf %61, %58 : vector<8x32xf32>
    %63 = arith.addf %60, %62 : vector<8x32xf32>
    %64 = vector.extract_strided_slice %53 {offsets = [0, 64], sizes = [8, 32], strides = [1, 1]} : vector<8x128xf32> to vector<8x32xf32>
    %65 = math.tanh %63 : vector<8x32xf32>
    %66 = arith.mulf %64, %65 : vector<8x32xf32>
    %67 = vector.extract_strided_slice %36 {offsets = [8, 0], sizes = [8, 128], strides = [1, 1]} : vector<80x128xf32> to vector<8x128xf32>
    %cst_27 = arith.constant dense<0.000000e+00> : vector<8x128xf32>
    %68 = tpu.matmul %66, %43, %cst_27 {dimension_numbers = #tpu.dot_dimension_numbers<[1], [0], [0], [1], [0, 0, 1, 1], [], []>} : vector<8x32xf32>, vector<32x128xf32>, vector<8x128xf32> -> vector<8x128xf32>
    %69 = arith.addf %67, %68 : vector<8x128xf32>
    %70 = arith.negf %69 : vector<8x128xf32>
    %71 = math.exp %70 : vector<8x128xf32>
    %cst_28 = arith.constant 1.000000e+00 : f32
    %72 = vector.broadcast %cst_28 : f32 to vector<8x128xf32>
    %73 = arith.addf %72, %71 : vector<8x128xf32>
    %74 = arith.divf %72, %73 : vector<8x128xf32>
    %75 = vector.extract_strided_slice %74 {offsets = [0, 96], sizes = [8, 32], strides = [1, 1]} : vector<8x128xf32> to vector<8x32xf32>
    %cst_29 = arith.constant 2.000000e+00 : f32
    %76 = vector.broadcast %cst_29 : f32 to vector<8x32xf32>
    %77 = arith.mulf %76, %75 : vector<8x32xf32>
    %cst_30 = arith.constant 1.000000e+00 : f32
    %78 = vector.broadcast %cst_30 : f32 to vector<8x32xf32>
    %79 = arith.subf %77, %78 : vector<8x32xf32>
    %80 = vector.extract_strided_slice %74 {offsets = [0, 32], sizes = [8, 32], strides = [1, 1]} : vector<8x128xf32> to vector<8x32xf32>
    %81 = arith.mulf %80, %63 : vector<8x32xf32>
    %82 = vector.extract_strided_slice %74 {offsets = [0, 0], sizes = [8, 32], strides = [1, 1]} : vector<8x128xf32> to vector<8x32xf32>
    %83 = arith.mulf %82, %79 : vector<8x32xf32>
    %84 = arith.addf %81, %83 : vector<8x32xf32>
    %85 = vector.extract_strided_slice %74 {offsets = [0, 64], sizes = [8, 32], strides = [1, 1]} : vector<8x128xf32> to vector<8x32xf32>
    %86 = math.tanh %84 : vector<8x32xf32>
    %87 = arith.mulf %85, %86 : vector<8x32xf32>
    %88 = vector.extract_strided_slice %36 {offsets = [16, 0], sizes = [8, 128], strides = [1, 1]} : vector<80x128xf32> to vector<8x128xf32>
    %cst_31 = arith.constant dense<0.000000e+00> : vector<8x128xf32>
    %89 = tpu.matmul %87, %43, %cst_31 {dimension_numbers = #tpu.dot_dimension_numbers<[1], [0], [0], [1], [0, 0, 1, 1], [], []>} : vector<8x32xf32>, vector<32x128xf32>, vector<8x128xf32> -> vector<8x128xf32>
    %90 = arith.addf %88, %89 : vector<8x128xf32>
    %91 = arith.negf %90 : vector<8x128xf32>
    %92 = math.exp %91 : vector<8x128xf32>
    %cst_32 = arith.constant 1.000000e+00 : f32
    %93 = vector.broadcast %cst_32 : f32 to vector<8x128xf32>
    %94 = arith.addf %93, %92 : vector<8x128xf32>
    %95 = arith.divf %93, %94 : vector<8x128xf32>
    %96 = vector.extract_strided_slice %95 {offsets = [0, 96], sizes = [8, 32], strides = [1, 1]} : vector<8x128xf32> to vector<8x32xf32>
    %cst_33 = arith.constant 2.000000e+00 : f32
    %97 = vector.broadcast %cst_33 : f32 to vector<8x32xf32>
    %98 = arith.mulf %97, %96 : vector<8x32xf32>
    %cst_34 = arith.constant 1.000000e+00 : f32
    %99 = vector.broadcast %cst_34 : f32 to vector<8x32xf32>
    %100 = arith.subf %98, %99 : vector<8x32xf32>
    %101 = vector.extract_strided_slice %95 {offsets = [0, 32], sizes = [8, 32], strides = [1, 1]} : vector<8x128xf32> to vector<8x32xf32>
    %102 = arith.mulf %101, %84 : vector<8x32xf32>
    %103 = vector.extract_strided_slice %95 {offsets = [0, 0], sizes = [8, 32], strides = [1, 1]} : vector<8x128xf32> to vector<8x32xf32>
    %104 = arith.mulf %103, %100 : vector<8x32xf32>
    %105 = arith.addf %102, %104 : vector<8x32xf32>
    %106 = vector.extract_strided_slice %95 {offsets = [0, 64], sizes = [8, 32], strides = [1, 1]} : vector<8x128xf32> to vector<8x32xf32>
    %107 = math.tanh %105 : vector<8x32xf32>
    %108 = arith.mulf %106, %107 : vector<8x32xf32>
    %109 = vector.extract_strided_slice %36 {offsets = [24, 0], sizes = [8, 128], strides = [1, 1]} : vector<80x128xf32> to vector<8x128xf32>
    %cst_35 = arith.constant dense<0.000000e+00> : vector<8x128xf32>
    %110 = tpu.matmul %108, %43, %cst_35 {dimension_numbers = #tpu.dot_dimension_numbers<[1], [0], [0], [1], [0, 0, 1, 1], [], []>} : vector<8x32xf32>, vector<32x128xf32>, vector<8x128xf32> -> vector<8x128xf32>
    %111 = arith.addf %109, %110 : vector<8x128xf32>
    %112 = arith.negf %111 : vector<8x128xf32>
    %113 = math.exp %112 : vector<8x128xf32>
    %cst_36 = arith.constant 1.000000e+00 : f32
    %114 = vector.broadcast %cst_36 : f32 to vector<8x128xf32>
    %115 = arith.addf %114, %113 : vector<8x128xf32>
    %116 = arith.divf %114, %115 : vector<8x128xf32>
    %117 = vector.extract_strided_slice %116 {offsets = [0, 96], sizes = [8, 32], strides = [1, 1]} : vector<8x128xf32> to vector<8x32xf32>
    %cst_37 = arith.constant 2.000000e+00 : f32
    %118 = vector.broadcast %cst_37 : f32 to vector<8x32xf32>
    %119 = arith.mulf %118, %117 : vector<8x32xf32>
    %cst_38 = arith.constant 1.000000e+00 : f32
    %120 = vector.broadcast %cst_38 : f32 to vector<8x32xf32>
    %121 = arith.subf %119, %120 : vector<8x32xf32>
    %122 = vector.extract_strided_slice %116 {offsets = [0, 32], sizes = [8, 32], strides = [1, 1]} : vector<8x128xf32> to vector<8x32xf32>
    %123 = arith.mulf %122, %105 : vector<8x32xf32>
    %124 = vector.extract_strided_slice %116 {offsets = [0, 0], sizes = [8, 32], strides = [1, 1]} : vector<8x128xf32> to vector<8x32xf32>
    %125 = arith.mulf %124, %121 : vector<8x32xf32>
    %126 = arith.addf %123, %125 : vector<8x32xf32>
    %127 = vector.extract_strided_slice %116 {offsets = [0, 64], sizes = [8, 32], strides = [1, 1]} : vector<8x128xf32> to vector<8x32xf32>
    %128 = math.tanh %126 : vector<8x32xf32>
    %129 = arith.mulf %127, %128 : vector<8x32xf32>
    %130 = vector.extract_strided_slice %36 {offsets = [32, 0], sizes = [8, 128], strides = [1, 1]} : vector<80x128xf32> to vector<8x128xf32>
    %cst_39 = arith.constant dense<0.000000e+00> : vector<8x128xf32>
    %131 = tpu.matmul %129, %43, %cst_39 {dimension_numbers = #tpu.dot_dimension_numbers<[1], [0], [0], [1], [0, 0, 1, 1], [], []>} : vector<8x32xf32>, vector<32x128xf32>, vector<8x128xf32> -> vector<8x128xf32>
    %132 = arith.addf %130, %131 : vector<8x128xf32>
    %133 = arith.negf %132 : vector<8x128xf32>
    %134 = math.exp %133 : vector<8x128xf32>
    %cst_40 = arith.constant 1.000000e+00 : f32
    %135 = vector.broadcast %cst_40 : f32 to vector<8x128xf32>
    %136 = arith.addf %135, %134 : vector<8x128xf32>
    %137 = arith.divf %135, %136 : vector<8x128xf32>
    %138 = vector.extract_strided_slice %137 {offsets = [0, 96], sizes = [8, 32], strides = [1, 1]} : vector<8x128xf32> to vector<8x32xf32>
    %cst_41 = arith.constant 2.000000e+00 : f32
    %139 = vector.broadcast %cst_41 : f32 to vector<8x32xf32>
    %140 = arith.mulf %139, %138 : vector<8x32xf32>
    %cst_42 = arith.constant 1.000000e+00 : f32
    %141 = vector.broadcast %cst_42 : f32 to vector<8x32xf32>
    %142 = arith.subf %140, %141 : vector<8x32xf32>
    %143 = vector.extract_strided_slice %137 {offsets = [0, 32], sizes = [8, 32], strides = [1, 1]} : vector<8x128xf32> to vector<8x32xf32>
    %144 = arith.mulf %143, %126 : vector<8x32xf32>
    %145 = vector.extract_strided_slice %137 {offsets = [0, 0], sizes = [8, 32], strides = [1, 1]} : vector<8x128xf32> to vector<8x32xf32>
    %146 = arith.mulf %145, %142 : vector<8x32xf32>
    %147 = arith.addf %144, %146 : vector<8x32xf32>
    %148 = vector.extract_strided_slice %137 {offsets = [0, 64], sizes = [8, 32], strides = [1, 1]} : vector<8x128xf32> to vector<8x32xf32>
    %149 = math.tanh %147 : vector<8x32xf32>
    %150 = arith.mulf %148, %149 : vector<8x32xf32>
    %151 = vector.extract_strided_slice %36 {offsets = [40, 0], sizes = [8, 128], strides = [1, 1]} : vector<80x128xf32> to vector<8x128xf32>
    %cst_43 = arith.constant dense<0.000000e+00> : vector<8x128xf32>
    %152 = tpu.matmul %150, %43, %cst_43 {dimension_numbers = #tpu.dot_dimension_numbers<[1], [0], [0], [1], [0, 0, 1, 1], [], []>} : vector<8x32xf32>, vector<32x128xf32>, vector<8x128xf32> -> vector<8x128xf32>
    %153 = arith.addf %151, %152 : vector<8x128xf32>
    %154 = arith.negf %153 : vector<8x128xf32>
    %155 = math.exp %154 : vector<8x128xf32>
    %cst_44 = arith.constant 1.000000e+00 : f32
    %156 = vector.broadcast %cst_44 : f32 to vector<8x128xf32>
    %157 = arith.addf %156, %155 : vector<8x128xf32>
    %158 = arith.divf %156, %157 : vector<8x128xf32>
    %159 = vector.extract_strided_slice %158 {offsets = [0, 96], sizes = [8, 32], strides = [1, 1]} : vector<8x128xf32> to vector<8x32xf32>
    %cst_45 = arith.constant 2.000000e+00 : f32
    %160 = vector.broadcast %cst_45 : f32 to vector<8x32xf32>
    %161 = arith.mulf %160, %159 : vector<8x32xf32>
    %cst_46 = arith.constant 1.000000e+00 : f32
    %162 = vector.broadcast %cst_46 : f32 to vector<8x32xf32>
    %163 = arith.subf %161, %162 : vector<8x32xf32>
    %164 = vector.extract_strided_slice %158 {offsets = [0, 32], sizes = [8, 32], strides = [1, 1]} : vector<8x128xf32> to vector<8x32xf32>
    %165 = arith.mulf %164, %147 : vector<8x32xf32>
    %166 = vector.extract_strided_slice %158 {offsets = [0, 0], sizes = [8, 32], strides = [1, 1]} : vector<8x128xf32> to vector<8x32xf32>
    %167 = arith.mulf %166, %163 : vector<8x32xf32>
    %168 = arith.addf %165, %167 : vector<8x32xf32>
    %169 = vector.extract_strided_slice %158 {offsets = [0, 64], sizes = [8, 32], strides = [1, 1]} : vector<8x128xf32> to vector<8x32xf32>
    %170 = math.tanh %168 : vector<8x32xf32>
    %171 = arith.mulf %169, %170 : vector<8x32xf32>
    %172 = vector.extract_strided_slice %36 {offsets = [48, 0], sizes = [8, 128], strides = [1, 1]} : vector<80x128xf32> to vector<8x128xf32>
    %cst_47 = arith.constant dense<0.000000e+00> : vector<8x128xf32>
    %173 = tpu.matmul %171, %43, %cst_47 {dimension_numbers = #tpu.dot_dimension_numbers<[1], [0], [0], [1], [0, 0, 1, 1], [], []>} : vector<8x32xf32>, vector<32x128xf32>, vector<8x128xf32> -> vector<8x128xf32>
    %174 = arith.addf %172, %173 : vector<8x128xf32>
    %175 = arith.negf %174 : vector<8x128xf32>
    %176 = math.exp %175 : vector<8x128xf32>
    %cst_48 = arith.constant 1.000000e+00 : f32
    %177 = vector.broadcast %cst_48 : f32 to vector<8x128xf32>
    %178 = arith.addf %177, %176 : vector<8x128xf32>
    %179 = arith.divf %177, %178 : vector<8x128xf32>
    %180 = vector.extract_strided_slice %179 {offsets = [0, 96], sizes = [8, 32], strides = [1, 1]} : vector<8x128xf32> to vector<8x32xf32>
    %cst_49 = arith.constant 2.000000e+00 : f32
    %181 = vector.broadcast %cst_49 : f32 to vector<8x32xf32>
    %182 = arith.mulf %181, %180 : vector<8x32xf32>
    %cst_50 = arith.constant 1.000000e+00 : f32
    %183 = vector.broadcast %cst_50 : f32 to vector<8x32xf32>
    %184 = arith.subf %182, %183 : vector<8x32xf32>
    %185 = vector.extract_strided_slice %179 {offsets = [0, 32], sizes = [8, 32], strides = [1, 1]} : vector<8x128xf32> to vector<8x32xf32>
    %186 = arith.mulf %185, %168 : vector<8x32xf32>
    %187 = vector.extract_strided_slice %179 {offsets = [0, 0], sizes = [8, 32], strides = [1, 1]} : vector<8x128xf32> to vector<8x32xf32>
    %188 = arith.mulf %187, %184 : vector<8x32xf32>
    %189 = arith.addf %186, %188 : vector<8x32xf32>
    %190 = vector.extract_strided_slice %179 {offsets = [0, 64], sizes = [8, 32], strides = [1, 1]} : vector<8x128xf32> to vector<8x32xf32>
    %191 = math.tanh %189 : vector<8x32xf32>
    %192 = arith.mulf %190, %191 : vector<8x32xf32>
    %193 = vector.extract_strided_slice %36 {offsets = [56, 0], sizes = [8, 128], strides = [1, 1]} : vector<80x128xf32> to vector<8x128xf32>
    %cst_51 = arith.constant dense<0.000000e+00> : vector<8x128xf32>
    %194 = tpu.matmul %192, %43, %cst_51 {dimension_numbers = #tpu.dot_dimension_numbers<[1], [0], [0], [1], [0, 0, 1, 1], [], []>} : vector<8x32xf32>, vector<32x128xf32>, vector<8x128xf32> -> vector<8x128xf32>
    %195 = arith.addf %193, %194 : vector<8x128xf32>
    %196 = arith.negf %195 : vector<8x128xf32>
    %197 = math.exp %196 : vector<8x128xf32>
    %cst_52 = arith.constant 1.000000e+00 : f32
    %198 = vector.broadcast %cst_52 : f32 to vector<8x128xf32>
    %199 = arith.addf %198, %197 : vector<8x128xf32>
    %200 = arith.divf %198, %199 : vector<8x128xf32>
    %201 = vector.extract_strided_slice %200 {offsets = [0, 96], sizes = [8, 32], strides = [1, 1]} : vector<8x128xf32> to vector<8x32xf32>
    %cst_53 = arith.constant 2.000000e+00 : f32
    %202 = vector.broadcast %cst_53 : f32 to vector<8x32xf32>
    %203 = arith.mulf %202, %201 : vector<8x32xf32>
    %cst_54 = arith.constant 1.000000e+00 : f32
    %204 = vector.broadcast %cst_54 : f32 to vector<8x32xf32>
    %205 = arith.subf %203, %204 : vector<8x32xf32>
    %206 = vector.extract_strided_slice %200 {offsets = [0, 32], sizes = [8, 32], strides = [1, 1]} : vector<8x128xf32> to vector<8x32xf32>
    %207 = arith.mulf %206, %189 : vector<8x32xf32>
    %208 = vector.extract_strided_slice %200 {offsets = [0, 0], sizes = [8, 32], strides = [1, 1]} : vector<8x128xf32> to vector<8x32xf32>
    %209 = arith.mulf %208, %205 : vector<8x32xf32>
    %210 = arith.addf %207, %209 : vector<8x32xf32>
    %211 = vector.extract_strided_slice %200 {offsets = [0, 64], sizes = [8, 32], strides = [1, 1]} : vector<8x128xf32> to vector<8x32xf32>
    %212 = math.tanh %210 : vector<8x32xf32>
    %213 = arith.mulf %211, %212 : vector<8x32xf32>
    %214 = vector.extract_strided_slice %36 {offsets = [64, 0], sizes = [8, 128], strides = [1, 1]} : vector<80x128xf32> to vector<8x128xf32>
    %cst_55 = arith.constant dense<0.000000e+00> : vector<8x128xf32>
    %215 = tpu.matmul %213, %43, %cst_55 {dimension_numbers = #tpu.dot_dimension_numbers<[1], [0], [0], [1], [0, 0, 1, 1], [], []>} : vector<8x32xf32>, vector<32x128xf32>, vector<8x128xf32> -> vector<8x128xf32>
    %216 = arith.addf %214, %215 : vector<8x128xf32>
    %217 = arith.negf %216 : vector<8x128xf32>
    %218 = math.exp %217 : vector<8x128xf32>
    %cst_56 = arith.constant 1.000000e+00 : f32
    %219 = vector.broadcast %cst_56 : f32 to vector<8x128xf32>
    %220 = arith.addf %219, %218 : vector<8x128xf32>
    %221 = arith.divf %219, %220 : vector<8x128xf32>
    %222 = vector.extract_strided_slice %221 {offsets = [0, 96], sizes = [8, 32], strides = [1, 1]} : vector<8x128xf32> to vector<8x32xf32>
    %cst_57 = arith.constant 2.000000e+00 : f32
    %223 = vector.broadcast %cst_57 : f32 to vector<8x32xf32>
    %224 = arith.mulf %223, %222 : vector<8x32xf32>
    %cst_58 = arith.constant 1.000000e+00 : f32
    %225 = vector.broadcast %cst_58 : f32 to vector<8x32xf32>
    %226 = arith.subf %224, %225 : vector<8x32xf32>
    %227 = vector.extract_strided_slice %221 {offsets = [0, 32], sizes = [8, 32], strides = [1, 1]} : vector<8x128xf32> to vector<8x32xf32>
    %228 = arith.mulf %227, %210 : vector<8x32xf32>
    %229 = vector.extract_strided_slice %221 {offsets = [0, 0], sizes = [8, 32], strides = [1, 1]} : vector<8x128xf32> to vector<8x32xf32>
    %230 = arith.mulf %229, %226 : vector<8x32xf32>
    %231 = arith.addf %228, %230 : vector<8x32xf32>
    %232 = vector.extract_strided_slice %221 {offsets = [0, 64], sizes = [8, 32], strides = [1, 1]} : vector<8x128xf32> to vector<8x32xf32>
    %233 = math.tanh %231 : vector<8x32xf32>
    %234 = arith.mulf %232, %233 : vector<8x32xf32>
    %235 = vector.extract_strided_slice %36 {offsets = [72, 0], sizes = [8, 128], strides = [1, 1]} : vector<80x128xf32> to vector<8x128xf32>
    %cst_59 = arith.constant dense<0.000000e+00> : vector<8x128xf32>
    %236 = tpu.matmul %234, %43, %cst_59 {dimension_numbers = #tpu.dot_dimension_numbers<[1], [0], [0], [1], [0, 0, 1, 1], [], []>} : vector<8x32xf32>, vector<32x128xf32>, vector<8x128xf32> -> vector<8x128xf32>
    %237 = arith.addf %235, %236 : vector<8x128xf32>
    %238 = arith.negf %237 : vector<8x128xf32>
    %239 = math.exp %238 : vector<8x128xf32>
    %cst_60 = arith.constant 1.000000e+00 : f32
    %240 = vector.broadcast %cst_60 : f32 to vector<8x128xf32>
    %241 = arith.addf %240, %239 : vector<8x128xf32>
    %242 = arith.divf %240, %241 : vector<8x128xf32>
    %243 = vector.extract_strided_slice %242 {offsets = [0, 96], sizes = [8, 32], strides = [1, 1]} : vector<8x128xf32> to vector<8x32xf32>
    %cst_61 = arith.constant 2.000000e+00 : f32
    %244 = vector.broadcast %cst_61 : f32 to vector<8x32xf32>
    %245 = arith.mulf %244, %243 : vector<8x32xf32>
    %cst_62 = arith.constant 1.000000e+00 : f32
    %246 = vector.broadcast %cst_62 : f32 to vector<8x32xf32>
    %247 = arith.subf %245, %246 : vector<8x32xf32>
    %248 = vector.extract_strided_slice %242 {offsets = [0, 32], sizes = [8, 32], strides = [1, 1]} : vector<8x128xf32> to vector<8x32xf32>
    %249 = arith.mulf %248, %231 : vector<8x32xf32>
    %250 = vector.extract_strided_slice %242 {offsets = [0, 0], sizes = [8, 32], strides = [1, 1]} : vector<8x128xf32> to vector<8x32xf32>
    %251 = arith.mulf %250, %247 : vector<8x32xf32>
    %252 = arith.addf %249, %251 : vector<8x32xf32>
    %253 = vector.extract_strided_slice %242 {offsets = [0, 64], sizes = [8, 32], strides = [1, 1]} : vector<8x128xf32> to vector<8x32xf32>
    %254 = math.tanh %252 : vector<8x32xf32>
    %255 = arith.mulf %253, %254 : vector<8x32xf32>
    %256 = arith.negf %42 : vector<8x128xf32>
    %257 = math.exp %256 : vector<8x128xf32>
    %cst_63 = arith.constant 1.000000e+00 : f32
    %258 = vector.broadcast %cst_63 : f32 to vector<8x128xf32>
    %259 = arith.addf %258, %257 : vector<8x128xf32>
    %260 = arith.divf %258, %259 : vector<8x128xf32>
    %261 = vector.extract_strided_slice %260 {offsets = [0, 96], sizes = [8, 32], strides = [1, 1]} : vector<8x128xf32> to vector<8x32xf32>
    %cst_64 = arith.constant 2.000000e+00 : f32
    %262 = vector.broadcast %cst_64 : f32 to vector<8x32xf32>
    %263 = arith.mulf %262, %261 : vector<8x32xf32>
    %cst_65 = arith.constant 1.000000e+00 : f32
    %264 = vector.broadcast %cst_65 : f32 to vector<8x32xf32>
    %265 = arith.subf %263, %264 : vector<8x32xf32>
    %266 = vector.extract_strided_slice %260 {offsets = [0, 64], sizes = [8, 32], strides = [1, 1]} : vector<8x128xf32> to vector<8x32xf32>
    %267 = vector.extract_strided_slice %260 {offsets = [0, 0], sizes = [8, 32], strides = [1, 1]} : vector<8x128xf32> to vector<8x32xf32>
    %268 = arith.mulf %267, %265 : vector<8x32xf32>
    %269 = math.tanh %268 : vector<8x32xf32>
    %270 = arith.mulf %266, %269 : vector<8x32xf32>
    %cst_66 = arith.constant 0.000000e+00 : f32
    %271 = vector.broadcast %cst_66 : f32 to vector<8x64xf32>
    %272 = tpu.concatenate %255, %270, %271 in 1 : vector<8x32xf32>, vector<8x32xf32>, vector<8x64xf32> -> vector<8x128xf32>
    %c0_67 = arith.constant 0 : index
    %c0_68 = arith.constant 0 : index
    %273 = vector.load %arg11[%c0_67, %c0_68] : memref<8x128xf32, #tpu.memory_space<vmem>>, vector<8x128xf32>
    tpu.vector_store %arg11[%c0_67, %c0_68], %272 {strides = array<i32>} : memref<8x128xf32, #tpu.memory_space<vmem>>, vector<8x128xf32>,
    return
  }
  func.func @transform_0(%arg0: i32) -> (i32, i32) {
    %c0_i32 = arith.constant 0 : i32
    %c0_i32_0 = arith.constant 0 : i32
    %c0_i32_1 = arith.constant 0 : i32
    return %c0_i32, %c0_i32_0 : i32, i32
  }
  func.func @transform_1(%arg0: i32) -> (i32, i32) {
    %c0_i32 = arith.constant 0 : i32
    %c0_i32_0 = arith.constant 0 : i32
    %c0_i32_1 = arith.constant 0 : i32
    return %c0_i32, %c0_i32_0 : i32, i32
  }
  func.func @transform_2(%arg0: i32) -> (i32, i32) {
    %c0_i32 = arith.constant 0 : i32
    %c0_i32_0 = arith.constant 0 : i32
    %c0_i32_1 = arith.constant 0 : i32
    return %c0_i32, %c0_i32_0 : i32, i32
  }
  func.func @transform_3(%arg0: i32) -> (i32, i32) {
    %c0_i32 = arith.constant 0 : i32
    %c0_i32_0 = arith.constant 0 : i32
    %c0_i32_1 = arith.constant 0 : i32
    return %c0_i32, %c0_i32_0 : i32, i32
  }
  func.func @transform_4(%arg0: i32) -> (i32, i32) {
    %c0_i32 = arith.constant 0 : i32
    %c0_i32_0 = arith.constant 0 : i32
    %c0_i32_1 = arith.constant 0 : i32
    return %c0_i32, %c0_i32_0 : i32, i32
  }
  func.func @transform_5(%arg0: i32) -> (i32, i32) {
    %c0_i32 = arith.constant 0 : i32
    %c0_i32_0 = arith.constant 0 : i32
    %c0_i32_1 = arith.constant 0 : i32
    return %c0_i32, %c0_i32_0 : i32, i32
  }
  func.func @transform_6(%arg0: i32) -> (i32, i32) {
    %c0_i32 = arith.constant 0 : i32
    %c0_i32_0 = arith.constant 0 : i32
    %c0_i32_1 = arith.constant 0 : i32
    return %c0_i32, %c0_i32_0 : i32, i32
  }
  func.func @transform_7(%arg0: i32) -> (i32, i32) {
    %c0_i32 = arith.constant 0 : i32
    %c0_i32_0 = arith.constant 0 : i32
    %c0_i32_1 = arith.constant 0 : i32
    return %c0_i32, %c0_i32_0 : i32, i32
  }
  func.func @transform_8(%arg0: i32) -> (i32, i32) {
    %c0_i32 = arith.constant 0 : i32
    %c0_i32_0 = arith.constant 0 : i32
    %c0_i32_1 = arith.constant 0 : i32
    return %c0_i32, %c0_i32_0 : i32, i32
  }
  func.func @transform_9(%arg0: i32) -> (i32, i32) {
    %c0_i32 = arith.constant 0 : i32
    %c0_i32_0 = arith.constant 0 : i32
    %c0_i32_1 = arith.constant 0 : i32
    return %c0_i32, %c0_i32_0 : i32, i32
  }
  func.func @transform_10(%arg0: i32) -> (i32, i32) {
    %c0_i32 = arith.constant 0 : i32
    %c0_i32_0 = arith.constant 0 : i32
    %c0_i32_1 = arith.constant 0 : i32
    return %c0_i32, %c0_i32_0 : i32, i32
  }
}

</mosaic_0001>

<bundles_post_ra>
// kernel: tpu_custom_call.1
= control target key start
LH: loop header
LB: loop body
LE: loop exit
PB: predicated region body
PF: predicated region fallthrough
CT: control target
= control target key end

     0   :  { %v77_v1 = vlaneseq  ;;  %v1919_v2 = vmov 0.0   ;;  %vm1920_vm0 = vmmov 0   ;;  %v1921_v4 = vmov 0.0|0.0   ;;  %s2406_s0 = inlined_call_operand.vmem [shape: f32[80,8], index: 0, kind: input, shape index: {}]   ;;  %s2407_s1 = inlined_call_operand.vmem [shape: f32[80,8], index: 1, kind: input, shape index: {}]   ;;  %s2408_s2 = inlined_call_operand.vmem [shape: f32[80,8], index: 2, kind: input, shape index: {}]   ;;  %s2409_s3 = inlined_call_operand.vmem [shape: f32[80,8], index: 3, kind: input, shape index: {}]   ;;  %s2410_s4 = inlined_call_operand.vmem [shape: f32[4,8], index: 4, kind: input, shape index: {}]   ;;  %s2411_s5 = inlined_call_operand.vmem [shape: f32[8,128], index: 5, kind: input, shape index: {}]   ;;  %s2412_s6 = inlined_call_operand.vmem [shape: f32[8,128], index: 6, kind: input, shape index: {}]   ;;  %s2413_s7 = inlined_call_operand.vmem [shape: f32[32,128], index: 7, kind: input, shape index: {}]   ;;  %s2414_s8 = inlined_call_operand.vmem [shape: f32[1,128], index: 8, kind: input, shape index: {}]   ;;  %s2415_s9 = inlined_call_operand.vmem [shape: f32[1,128], index: 9, kind: input, shape index: {}]   ;;  %s2416_s10 = inlined_call_operand.hbm [shape: f32[8,128], index: 10, kind: output, shape index: {}]  }
   0x1   :  { %v387_v0 = vld [vmem:[%s2412_s6] sm:$0xff]  ;;  %1647 = vmatprep.subr.mxu1 %v1919_v2  ;;  %1649 = vmatprep.mubr.msk.f32.mxu1 %vm1920_vm0, %v1919_v2  ;;  %v46_v11 = vld [vmem:[%s2406_s0 + $0x48] sm:$0xff] }
   0x2   :  { %1648 = vmatpush3.msra.mxu1 %v387_v0  ;;  %v78_v3 = vshrl.u32 %v77_v1, 7  ;;  %v36_v5 = vld [vmem:[%s2410_s4] sm:$0xf]  ;;  %v56_v12 = vld [vmem:[%s2407_s1 + $0x48] sm:$0xff] }
   0x3   :  { %1762 = vmatprep.subr.bf16.mxu1 %v1921_v4  ;;  %v233_v6 = vld [vmem:[%s2411_s5] sm:$0xff]  ;;  %v66_v13 = vld [vmem:[%s2408_s2 + $0x48] sm:$0xff] }
   0x4   :  { %v79_v7 = vsub.s32 0, %v78_v3  ;;  %v93_v8 = vsub.s32 1, %v78_v3  ;;  %v117_v9 = vsub.s32 2, %v78_v3  ;;  %v141_v10 = vsub.s32 3, %v78_v3  ;;  %1630 = vmatprep.subr.mxu0 %v233_v6  ;;  %v76_v14 = vld [vmem:[%s2409_s3 + $0x48] sm:$0xff]  ;;  %v37_v18 = vld [vmem:[%s2406_s0] sm:$0xff] }
   0x5   :  { %1631 = vmatpush3.msra.mxu0 %v233_v6  ;;  %v57_v19 = vld [vmem:[%s2408_s2] sm:$0xff] }
   0x6   :  { %v2006_v15 = vrot.slane %v36_v5, %v79_v7  ;;  %v2008_v16 = vrot.slane %v36_v5, %v93_v8  ;;  %v2010_v17 = vrot.slane %v36_v5, %v117_v9  ;;  %1774 = vmatprep.subr.bf16.mxu0 %v1921_v4  ;;  %v2019_v20 = vrot.slane %v36_v5, %v141_v10  ;;  %v47_v21 = vld [vmem:[%s2407_s1] sm:$0xff] }
   0x7   :  { %15 = vsyncpa [#allocation3], 0  ;;  %v67_v26 = vld [vmem:[%s2409_s3] sm:$0xff]  ;;  %v58_v27 = vld [vmem:[%s2408_s2 + $0x8] sm:$0xff]  ;;  %vm241_vm1 = vcmask 64512   ;;  %s1922_s26 = smov 32  }
   0x8   :  { %v90_v22 = vmul.f32 %v2006_v15, %v66_v13  ;;  %v104_v23 = vmul.f32 %v2008_v16, %v46_v11  ;;  %v128_v24 = vmul.f32 %v2010_v17, %v56_v12  ;;  %v162_v25 = vmul.f32 %v2006_v15, %v46_v11  ;;  %v38_v32 = vld [vmem:[%s2406_s0 + $0x8] sm:$0xff]  ;;  %v465_v56 = vld [vmem:[%s2413_s7] sm:$0xff]  ;;  %v467_v7 = vld [vmem:[%s2413_s7 + $0x10] sm:$0xff]  ;;  %s1925_s15 = smov [#allocation2]  }
   0x9   :  { %v172_v28 = vmul.f32 %v2008_v16, %v56_v12  ;;  %v192_v29 = vmul.f32 %v2010_v17, %v76_v14  ;;  %v81_v30 = vmul.f32 %v2006_v15, %v57_v19  ;;  %v95_v31 = vmul.f32 %v2008_v16, %v37_v18  ;;  %v48_v37 = vld [vmem:[%s2407_s1 + $0x8] sm:$0xff]  ;;  %v468_v8 = vld [vmem:[%s2413_s7 + $0x18] sm:$0xff]  ;;  %s1515_s16 = sshll.u32 %s1925_s15, 4  ;;  %s1516_s16 = int_to_ptr.vmem [resolvable:$true] %s1515_s16 }
   0xa   :  { %v114_v33 = vadd.f32 %v104_v23, %v90_v22  ;;  %v119_v34 = vmul.f32 %v2010_v17, %v47_v21  ;;  %v153_v35 = vmul.f32 %v2006_v15, %v37_v18  ;;  %v163_v36 = vmul.f32 %v2008_v16, %v47_v21  ;;  %v68_v41 = vld [vmem:[%s2409_s3 + $0x8] sm:$0xff]  ;;  %v2107_v18 = vld [vmem:[%s2414_s8] ss:$0 sm:$0xff]  ;;  %s1923_s8 = smov 64   ;;  %s1895_s17 = scalar_lea.vmem %s1516_s16, 128 }
   0xb   :  { %v182_v38 = vadd.f32 %v172_v28, %v162_v25  ;;  %v105_v39 = vadd.f32 %v95_v31, %v81_v30  ;;  %v183_v40 = vmul.f32 %v2010_v17, %v67_v26  ;;  %v82_v42 = vmul.f32 %v2006_v15, %v58_v27  ;;  %v466_v57 = vld [vmem:[%s2413_s7 + $0x8] sm:$0xff]  ;;  %p1896_p0 = scmp.ne.s32.totalorder %s1516_s16, %s1895_s17  ;;  %p1900_p1 = scmp.lt.s32.totalorder %s1516_s16, %s1516_s16 }
   0xc   :  { %v138_v43 = vadd.f32 %v128_v24, %v114_v33  ;;  %v173_v44 = vadd.f32 %v163_v36, %v153_v35  ;;  %v96_v45 = vmul.f32 %v2008_v16, %v38_v32  ;;  %v120_v46 = vmul.f32 %v2010_v17, %v48_v37  ;;  %p1901_p2 = scmp.lt.s32.totalorder %s1895_s17, %s1895_s17 }
   0xd   :  { %v202_v47 = vadd.f32 %v192_v29, %v182_v38  ;;  %v129_v48 = vadd.f32 %v119_v34, %v105_v39  ;;  %v154_v49 = vmul.f32 %v2006_v15, %v38_v32  ;;  %v164_v50 = vmul.f32 %v2008_v16, %v48_v37 }
   0xe   :  { %v152_v51 = vadd.f32 %v2019_v20, %v138_v43  ;;  %v193_v52 = vadd.f32 %v183_v40, %v173_v44  ;;  %v106_v53 = vadd.f32 %v96_v45, %v82_v42  ;;  %v184_v54 = vmul.f32 %v2010_v17, %v68_v41  ;;  %p1902_p3 = por %p1901_p2, %p1900_p1 }
   0xf   :  { %v212_v55 = vadd.f32 %v202_v47, %v2019_v20  ;;  %v143_v58 = vadd.f32 %v2019_v20, %v129_v48  ;;  %v174_v59 = vadd.f32 %v164_v50, %v154_v49  ;;  %v2067_v0 = vpack.c.bf16 %v466_v57, %v465_v56  ;;  %v39_v56 = vld [vmem:[%s2406_s0 + $0x10] sm:$0xff] }
  0x10   :  { %v203_v60 = vadd.f32 %v193_v52, %v2019_v20  ;;  %v130_v61 = vadd.f32 %v120_v46, %v106_v53  ;;  %v2083_v11 = vpack.c.bf16 %v468_v8, %v467_v7  ;;  %vm469_vm2 = vcmask 261120   ;;  %v49_v57 = vld [vmem:[%s2407_s1 + $0x10] sm:$0xff]  ;;  %v60_v8 = vld [vmem:[%s2408_s2 + $0x18] sm:$0xff]  ;;  %p1903_p4 = pnand %p1902_p3, %p1896_p0 }
  0x11   :  { %v222_v62 = vmax.f32 %v152_v51, %v212_v55  ;;  %v194_v63 = vadd.f32 %v184_v54, %v174_v59  ;;  %v69_v59 = vld [vmem:[%s2409_s3 + $0x10] sm:$0xff]  ;;  %vm1506_vm3 = vcmask 523264  }
  0x12   :  { %v213_v1 = vmax.f32 %v143_v58, %v203_v60  ;;  %v144_v3 = vadd.f32 %v2019_v20, %v130_v61  ;;  %v59_v58 = vld [vmem:[%s2408_s2 + $0x10] sm:$0xff]  ;;  %v97_v61 = vmul.f32 %v2008_v16, %v39_v56  ;;  %v185_v7 = vmul.f32 %v2010_v17, %v69_v59 }
  0x13   :  { %v2070_v5 = vmax.f32 %v222_v62, 0.0  ;;  %v204_v6 = vadd.f32 %v194_v63, %v2019_v20  ;;  %v83_v60 = vmul.f32 %v2006_v15, %v59_v58  ;;  %v121_v62 = vmul.f32 %v2010_v17, %v49_v57  ;;  %v63_v58 = vld [vmem:[%s2408_s2 + $0x30] sm:$0xff] }
  0x14   :  { %v223_v9 = vmax.f32 %v213_v1, 0.0  ;;  %v155_v63 = vmul.f32 %v2006_v15, %v39_v56  ;;  %v40_v1 = vld [vmem:[%s2406_s0 + $0x18] sm:$0xff] }
  0x15   :  { %1650 = vmatmul.mubr.msk.f32.vlgmr.msra.gmra.mrb[0].mxu1 %vm241_vm1, %v2070_v5  ;;  %v214_v10 = vmax.f32 %v144_v3, %v204_v6  ;;  %v50_v3 = vld [vmem:[%s2407_s1 + $0x18] sm:$0xff]  ;;  %v165_v6 = vmul.f32 %v2008_v16, %v49_v57  ;;  %v43_v57 = vld [vmem:[%s2406_s0 + $0x30] sm:$0xff] }
  0x16   :  { %1764 = vmatpush3.bf16.msra.mxu1 %v2067_v0  ;;  %1632 = vmatprep.mubr.msk.f32.mxu0 %vm241_vm1, %v223_v9  ;;  %v70_v9 = vld [vmem:[%s2409_s3 + $0x18] sm:$0xff] }
  0x17   :  { %v224_v12 = vmax.f32 %v214_v10, 0.0  ;;  %1765 = vmatprep.subr.bf16.mxu1 %v1921_v4  ;;  %1660 = vmatprep.mubr.msk.f32.mxu1 %vm1920_vm0, %v1919_v2  ;;  %v98_v10 = vmul.f32 %v2008_v16, %v40_v1 }
  0x19   :  { %1633 = vmatmul.mubr.msk.f32.vlgmr.msra.gmra.mrb[0].mxu0 %vm241_vm1, %v224_v12  ;;  %v122_v12 = vmul.f32 %v2010_v17, %v50_v3 }
  0x1a   :  { %1767 = vmatpush3.bf16.msra.mxu1 %v2083_v11  ;;  %1776 = vmatpush3.bf16.msra.mxu0 %v2067_v0 }
  0x1b   :  { %1768 = vmatprep.subr.bf16.mxu1 %v1921_v4  ;;  %1777 = vmatprep.subr.bf16.mxu0 %v1921_v4 }
  0x1d   :  { %1661 = vmatmul.mubr.f32.vlgmr.msra.gmra.mrb[2].mxu1 %v1919_v2 }
  0x1e   :  { %1770 = vmatpush3.bf16.msra.mxu1 %v2067_v0  ;;  %1671 = vmatprep.mubr.msk.f32.mxu1 %vm1920_vm0, %v1919_v2 }
  0x1f   :  { %1771 = vmatprep.subr.bf16.mxu1 %v1921_v4  ;;  %1779 = vmatpush3.bf16.msra.mxu0 %v2083_v11 }
  0x20   :  { %1786 = vmatprep.subr.bf16.mxu0 %v1921_v4 }
  0x22   :  { %1773 = vmatpush3.bf16.msra.mxu1 %v2083_v11 }
  0x23   :  { %1780 = vmatprep.subr.bf16.mxu1 %v1921_v4 }
  0xe8   :  { %v2102_v13 = vpop.f32.mrb[0].mxu1 }
  0xe9   :  { %v1651_v14 = vpop.f32.mrb[1].mxu1 }
  0xea   :  { %v41_v14 = vld [vmem:[%s2406_s0 + $0x20] sm:$0xff] }
  0xec   :  { %v1634_v19 = vpop.f32.mrb[0].mxu0 }
  0xed   :  { %v338_v21 = vpop.f32.mrb[1].mxu0  ;;  %v344_v41 = vadd.f32 %v1634_v19, %v2107_v18  ;;  %v107_v19 = vadd.f32 %v97_v61, %v83_v60 }
  0xee   :  { %v339_v22 = vadd.f32 %v2107_v18, %v338_v21  ;;  %v84_v21 = vmul.f32 %v2006_v15, %v60_v8  ;;  %v53_v8 = vld [vmem:[%s2407_s1 + $0x30] sm:$0xff] }
  0xf0   :  { %v539_v23 = vpop.f32.mrb[2].mxu1 }
  0xf1   :  { %v543_v24 = vadd.f32 %v539_v23, %v339_v22  ;;  %v1662_v25 = vpop.f32.mrb[3].mxu1  ;;  %v156_v22 = vmul.f32 %v2006_v15, %v40_v1  ;;  %v166_v23 = vmul.f32 %v2008_v16, %v50_v3 }
  0xf2   :  { %v61_v25 = vld [vmem:[%s2408_s2 + $0x20] sm:$0xff] }
  0xf3   :  { %v1536_v26 = vmul.f32 -1.442695, %v543_v24  ;;  %v51_v24 = vld [vmem:[%s2407_s1 + $0x20] sm:$0xff] }
  0xf5   :  { %1829 = vpow2.f32 %v1536_v26  ;;  %v175_v26 = vadd.f32 %v165_v6, %v155_v63 }
  0xff   :  { %v1830_v27 = vpop.eup %1829 }
 0x100   :  { %v547_v28 = vadd.f32 1.0, %v1830_v27  ;;  %v186_v27 = vmul.f32 %v2010_v17, %v70_v9 }
 0x102   :  { %1831 = vrcp.f32 %v547_v28  ;;  %v71_v28 = vld [vmem:[%s2409_s3 + $0x20] sm:$0xff] }
 0x10c   :  { %v1832_v29 = vpop.eup %1831 }
 0x10d   :  { %v550_v30 = vmul.f32 2.0, %v1832_v29  ;;  %v552_v34 = vmul.f32 0.0, %v1832_v29 }
 0x10f   :  { %v1537_v31 = vadd.f32 -1.0, %v550_v30  ;;  %v99_v30 = vmul.f32 %v2008_v16, %v41_v14 }
 0x111   :  { %554 = vrot.lane.b32.xlu0 %v1537_v31, %s1922_s26  ;;  %v131_v31 = vadd.f32 %v121_v62, %v107_v19  ;;  %v101_v19 = vmul.f32 %v2008_v16, %v43_v57 }
 0x183   :  { %v555_v32 = vpop.permute.xlu0 %554 }
 0x184   :  { %v557_v33 = vmul.f32 %v1832_v29, %v555_v32  ;;  %v108_v32 = vadd.f32 %v98_v10, %v84_v21  ;;  %v64_v21 = vld [vmem:[%s2408_s2 + $0x38] sm:$0xff] }
 0x186   :  { %559 = vrot.lane.b32.xlu0 %v557_v33, %s1922_s26  ;;  %v176_v33 = vadd.f32 %v166_v23, %v156_v22 }
 0x1f8   :  { %v560_v35 = vpop.permute.xlu0 %559 }
 0x1f9   :  { %v562_v36 = vadd.f32 %v560_v35, %v552_v34  ;;  %v123_v34 = vmul.f32 %v2010_v17, %v51_v24  ;;  %v62_v35 = vld [vmem:[%s2408_s2 + $0x28] sm:$0xff] }
 0x1fb   :  { %1833 = vtanh.f32 %v562_v36 }
 0x205   :  { %v1834_v37 = vpop.eup %1833 }
 0x206   :  { %565 = vrot.lane.b32.xlu1 %v1834_v37, %s1922_s26 }
 0x278   :  { %v566_v38 = vpop.permute.xlu1 %565 }
 0x279   :  { %v568_v39 = vmul.f32 %v1832_v29, %v566_v38  ;;  %v85_v29 = vmul.f32 %v2006_v15, %v61_v25  ;;  %v157_v38 = vmul.f32 %v2006_v15, %v41_v14  ;;  %v87_v14 = vmul.f32 %v2006_v15, %v63_v58 }
 0x27a   :  { %v125_v25 = vmul.f32 %v2010_v17, %v53_v8 }
 0x27b   :  { %570 = vrot.lane.b32.xlu1 %v568_v39, %s1923_s8  ;;  %v109_v37 = vadd.f32 %v99_v30, %v85_v29  ;;  %v167_v39 = vmul.f32 %v2008_v16, %v51_v24  ;;  %v159_v29 = vmul.f32 %v2006_v15, %v43_v57  ;;  %v169_v30 = vmul.f32 %v2008_v16, %v53_v8 }
 0x2ed   :  { %v571_v40 = vpop.permute.xlu1 %570 }
 0x2ee   :  { %1672 = vmatmul.mubr.msk.f32.vlgmr.msra.gmra.mrb[4].mxu1 %vm469_vm2, %v571_v40  ;;  %v42_v40 = vld [vmem:[%s2406_s0 + $0x28] sm:$0xff] }
 0x2ef   :  { %1782 = vmatpush3.bf16.msra.mxu1 %v2067_v0  ;;  %1693 = vmatprep.mubr.msk.f32.mxu1 %vm1920_vm0, %v1919_v2  ;;  %v158_v63 = vmul.f32 %v2006_v15, %v42_v40 }
 0x2f0   :  { %1783 = vmatprep.subr.bf16.mxu1 %v1921_v4 }
 0x2f3   :  { %1785 = vmatpush3.bf16.msra.mxu1 %v2083_v11 }
 0x2f4   :  { %1792 = vmatprep.subr.bf16.mxu1 %v1921_v4 }
 0x3c1   :  { %v640_v42 = vpop.f32.mrb[4].mxu1 }
 0x3c2   :  { %v644_v43 = vadd.f32 %v640_v42, %v344_v41  ;;  %v1673_v44 = vpop.f32.mrb[5].mxu1  ;;  %v145_v41 = vadd.f32 %v2019_v20, %v131_v31  ;;  %v132_v42 = vadd.f32 %v122_v12, %v108_v32  ;;  %v73_v12 = vld [vmem:[%s2409_s3 + $0x30] sm:$0xff]  ;;  %v54_v31 = vld [vmem:[%s2407_s1 + $0x38] sm:$0xff] }
 0x3c3   :  { %v187_v44 = vmul.f32 %v2010_v17, %v71_v28  ;;  %v111_v28 = vadd.f32 %v101_v19, %v87_v14 }
 0x3c4   :  { %v1539_v45 = vmul.f32 -1.442695, %v644_v43  ;;  %v196_v43 = vadd.f32 %v186_v27, %v176_v33 }
 0x3c6   :  { %1835 = vpow2.f32 %v1539_v45 }
 0x3d0   :  { %v1836_v46 = vpop.eup %1835 }
 0x3d1   :  { %v648_v47 = vadd.f32 1.0, %v1836_v46  ;;  %v133_v46 = vadd.f32 %v123_v34, %v109_v37  ;;  %v189_v34 = vmul.f32 %v2010_v17, %v73_v12 }
 0x3d3   :  { %1837 = vrcp.f32 %v648_v47  ;;  %v177_v47 = vadd.f32 %v167_v39, %v157_v38  ;;  %v147_v61 = vadd.f32 %v2019_v20, %v133_v46  ;;  %v135_v38 = vadd.f32 %v125_v25, %v111_v28 }
 0x3d4   :  { %v179_v39 = vadd.f32 %v169_v30, %v159_v29  ;;  %v170_v46 = vmul.f32 %v2008_v16, %v54_v31 }
 0x3d5   :  { %v197_v62 = vadd.f32 %v187_v44, %v177_v47  ;;  %v126_v44 = vmul.f32 %v2010_v17, %v54_v31  ;;  %v149_v47 = vadd.f32 %v2019_v20, %v135_v38 }
 0x3d7   :  { %v207_v10 = vadd.f32 %v197_v62, %v2019_v20 }
 0x3d9   :  { %v217_v27 = vmax.f32 %v147_v61, %v207_v10 }
 0x3db   :  { %v227_v37 = vmax.f32 %v217_v27, 0.0 }
 0x3dd   :  { %v2122_v48 = vpop.eup %1837 }
 0x3de   :  { %v651_v49 = vmul.f32 2.0, %v2122_v48  ;;  %v653_v53 = vmul.f32 %v2122_v48, %v562_v36  ;;  %v195_v36 = vadd.f32 %v185_v7, %v175_v26  ;;  %v44_v26 = vld [vmem:[%s2406_s0 + $0x38] sm:$0xff] }
 0x3e0   :  { %v1540_v50 = vadd.f32 -1.0, %v651_v49  ;;  %v205_v45 = vadd.f32 %v195_v36, %v2019_v20  ;;  %v52_v49 = vld [vmem:[%s2407_s1 + $0x28] sm:$0xff]  ;;  %v88_v36 = vmul.f32 %v2006_v15, %v64_v21 }
 0x3e1   :  { %v124_v56 = vmul.f32 %v2010_v17, %v52_v49  ;;  %v168_v6 = vmul.f32 %v2008_v16, %v52_v49  ;;  %v199_v49 = vadd.f32 %v189_v34, %v179_v39 }
 0x3e2   :  { %655 = vrot.lane.b32.xlu0 %v1540_v50, %s1922_s26  ;;  %v72_v50 = vld [vmem:[%s2409_s3 + $0x28] sm:$0xff]  ;;  %v215_v60 = vmax.f32 %v145_v41, %v205_v45  ;;  %v45_v41 = vld [vmem:[%s2406_s0 + $0x40] sm:$0xff]  ;;  %v160_v45 = vmul.f32 %v2006_v15, %v44_v26 }
 0x3e3   :  { %v188_v7 = vmul.f32 %v2010_v17, %v72_v50  ;;  %v178_v24 = vadd.f32 %v168_v6, %v158_v63  ;;  %v103_v58 = vmul.f32 %v2008_v16, %v45_v41  ;;  %v161_v62 = vmul.f32 %v2006_v15, %v45_v41 }
 0x3e4   :  { %v225_v9 = vmax.f32 %v215_v60, 0.0 }
 0x3e5   :  { %v198_v33 = vadd.f32 %v188_v7, %v178_v24 }
 0x3e6   :  { %1635 = vmatprep.mubr.msk.f32.mxu0 %vm241_vm1, %v225_v9 }
 0x454   :  { %v656_v51 = vpop.permute.xlu0 %655 }
 0x455   :  { %v658_v52 = vmul.f32 %v2122_v48, %v656_v51  ;;  %v86_v51 = vmul.f32 %v2006_v15, %v62_v35  ;;  %v74_v35 = vld [vmem:[%s2409_s3 + $0x38] sm:$0xff] }
 0x457   :  { %660 = vrot.lane.b32.xlu1 %v658_v52, %s1922_s26  ;;  %v146_v52 = vadd.f32 %v2019_v20, %v132_v42  ;;  %v65_v42 = vld [vmem:[%s2408_s2 + $0x40] sm:$0xff] }
 0x458   :  { %v89_v57 = vmul.f32 %v2006_v15, %v65_v42 }
 0x4c9   :  { %v661_v54 = vpop.permute.xlu1 %660 }
 0x4ca   :  { %v2129_v55 = vadd.f32 %v661_v54, %v653_v53  ;;  %v206_v53 = vadd.f32 %v196_v43, %v2019_v20  ;;  %v100_v54 = vmul.f32 %v2008_v16, %v42_v40  ;;  %v102_v40 = vmul.f32 %v2008_v16, %v44_v26 }
 0x4cb   :  { %v208_v43 = vadd.f32 %v198_v33, %v2019_v20 }
 0x4cc   :  { %1839 = vtanh.f32 %v2129_v55  ;;  %v216_v1 = vmax.f32 %v146_v52, %v206_v53  ;;  %v110_v3 = vadd.f32 %v100_v54, %v86_v51  ;;  %v112_v50 = vadd.f32 %v102_v40, %v88_v36  ;;  %v55_v52 = vld [vmem:[%s2407_s1 + $0x40] sm:$0xff] }
 0x4cd   :  { %v190_v51 = vmul.f32 %v2010_v17, %v74_v35  ;;  %v180_v54 = vadd.f32 %v170_v46, %v160_v45  ;;  %v127_v61 = vmul.f32 %v2010_v17, %v55_v52  ;;  %v171_v6 = vmul.f32 %v2008_v16, %v55_v52 }
 0x4ce   :  { %v226_v22 = vmax.f32 %v216_v1, 0.0  ;;  %v134_v23 = vadd.f32 %v124_v56, %v110_v3  ;;  %v75_v56 = vld [vmem:[%s2409_s3 + $0x40] sm:$0xff]  ;;  %v136_v60 = vadd.f32 %v126_v44, %v112_v50  ;;  %v113_v3 = vadd.f32 %v103_v58, %v89_v57 }
 0x4cf   :  { %v200_v1 = vadd.f32 %v190_v51, %v180_v54  ;;  %v191_v9 = vmul.f32 %v2010_v17, %v75_v56  ;;  %v181_v14 = vadd.f32 %v171_v6, %v161_v62 }
 0x4d0   :  { %1636 = vmatmul.mubr.msk.f32.gmra.mrb[2].mxu0 %vm241_vm1, %v226_v22  ;;  %v148_v32 = vadd.f32 %v2019_v20, %v134_v23  ;;  %v150_v8 = vadd.f32 %v2019_v20, %v136_v60  ;;  %v137_v12 = vadd.f32 %v127_v61, %v113_v3 }
 0x4d1   :  { %1638 = vmatprep.mubr.msk.f32.mxu0 %vm241_vm1, %v227_v37  ;;  %v210_v10 = vadd.f32 %v200_v1, %v2019_v20  ;;  %v201_v22 = vadd.f32 %v191_v9, %v181_v14 }
 0x4d2   :  { %v218_v53 = vmax.f32 %v148_v32, %v208_v43  ;;  %v151_v15 = vadd.f32 %v2019_v20, %v137_v12 }
 0x4d3   :  { %v220_v21 = vmax.f32 %v150_v8, %v210_v10  ;;  %v211_v16 = vadd.f32 %v201_v22, %v2019_v20 }
 0x4d4   :  { %v228_v63 = vmax.f32 %v218_v53, 0.0 }
 0x4d5   :  { %v230_v23 = vmax.f32 %v220_v21, 0.0  ;;  %v221_v24 = vmax.f32 %v151_v15, %v211_v16 }
 0x4d6   :  { %v1840_v59 = vpop.eup %1839  ;;  %1639 = vmatmul.mubr.msk.f32.gmra.mrb[4].mxu0 %vm241_vm1, %v228_v63 }
 0x4d7   :  { %666 = vrot.lane.b32.xlu0 %v1840_v59, %s1922_s26  ;;  %v209_v59 = vadd.f32 %v199_v49, %v2019_v20  ;;  %v231_v17 = vmax.f32 %v221_v24, 0.0 }
 0x4d9   :  { %v219_v7 = vmax.f32 %v149_v47, %v209_v59 }
 0x4db   :  { %v229_v19 = vmax.f32 %v219_v7, 0.0 }
 0x4dd   :  { %1641 = vmatprep.mubr.msk.f32.mxu0 %vm241_vm1, %v229_v19 }
 0x4de   :  { %1642 = vmatmul.mubr.msk.f32.gmra.mrb[6].mxu0 %vm241_vm1, %v230_v23 }
 0x4df   :  { %1644 = vmatprep.mubr.msk.f32.mxu0 %vm241_vm1, %v231_v17 }
 0x4e2   :  { %1645 = vmatmul.mubr.msk.f32.gmra.mrb[8].mxu0 %vm241_vm1, %v2070_v5 }
 0x4e3   :  { %1682 = vmatprep.mubr.msk.f32.mxu0 %vm1920_vm0, %v1919_v2 }
 0x549   :  { %v667_v25 = vpop.permute.xlu0 %666 }
 0x54a   :  { %v669_v26 = vmul.f32 %v2122_v48, %v667_v25 }
 0x54c   :  { %671 = vrot.lane.b32.xlu1 %v669_v26, %s1923_s8 }
 0x5a3   :  { %v1637_v27 = vpop.f32.mrb[2].mxu0 }
 0x5a4   :  { %v348_v28 = vpop.f32.mrb[3].mxu0 }
 0x5a5   :  { %v349_v33 = vadd.f32 %v2107_v18, %v348_v28 }
 0x5a9   :  { %v2286_v20 = vpop.f32.mrb[4].mxu0 }
 0x5aa   :  { %v2288_v29 = vpop.f32.mrb[5].mxu0 }
 0x5ab   :  { %v359_v14 = vadd.f32 %v2107_v18, %v2288_v29 }
 0x5b1   :  { %v2290_v30 = vpop.f32.mrb[6].mxu0 }
 0x5b2   :  { %v2292_v31 = vpop.f32.mrb[7].mxu0 }
 0x5b5   :  { %v2298_v5 = vpop.f32.mrb[8].mxu0 }
 0x5b6   :  { %v2301_v48 = vpop.f32.mrb[9].mxu0 }
 0x5be   :  { %v672_v32 = vpop.permute.xlu1 %671 }
 0x5bf   :  { %1683 = vmatmul.mubr.msk.f32.vlgmr.msra.gmra.mrb[10].mxu0 %vm469_vm2, %v672_v32 }
 0x5c0   :  { %1788 = vmatpush3.bf16.msra.mxu0 %v2067_v0  ;;  %1704 = vmatprep.mubr.msk.f32.mxu0 %vm1920_vm0, %v1919_v2 }
 0x5c1   :  { %1789 = vmatprep.subr.bf16.mxu0 %v1921_v4 }
 0x5c4   :  { %1791 = vmatpush3.bf16.msra.mxu0 %v2083_v11 }
 0x5c5   :  { %1798 = vmatprep.subr.bf16.mxu0 %v1921_v4 }
 0x692   :  { %v741_v34 = vpop.f32.mrb[10].mxu0 }
 0x693   :  { %v745_v35 = vadd.f32 %v741_v34, %v349_v33  ;;  %v1684_v36 = vpop.f32.mrb[11].mxu0 }
 0x695   :  { %v1542_v37 = vmul.f32 -1.442695, %v745_v35 }
 0x697   :  { %1841 = vpow2.f32 %v1542_v37  ;;  %v364_v37 = vadd.f32 %v2286_v20, %v2107_v18 }
 0x6a1   :  { %v1842_v38 = vpop.eup %1841 }
 0x6a2   :  { %v749_v39 = vadd.f32 1.0, %v1842_v38 }
 0x6a4   :  { %1843 = vrcp.f32 %v749_v39 }
 0x6ae   :  { %v1844_v40 = vpop.eup %1843 }
 0x6af   :  { %v752_v41 = vmul.f32 2.0, %v1844_v40  ;;  %v754_v45 = vmul.f32 %v1844_v40, %v2129_v55  ;;  %v354_v55 = vadd.f32 %v1637_v27, %v2107_v18 }
 0x6b1   :  { %v1543_v42 = vadd.f32 -1.0, %v752_v41 }
 0x6b3   :  { %756 = vrot.lane.b32.xlu0 %v1543_v42, %s1922_s26 }
 0x725   :  { %v757_v43 = vpop.permute.xlu0 %756 }
 0x726   :  { %v759_v44 = vmul.f32 %v1844_v40, %v757_v43 }
 0x728   :  { %761 = vrot.lane.b32.xlu1 %v759_v44, %s1922_s26 }
 0x79a   :  { %v762_v46 = vpop.permute.xlu1 %761 }
 0x79b   :  { %v764_v47 = vadd.f32 %v762_v46, %v754_v45 }
 0x79d   :  { %1845 = vtanh.f32 %v764_v47 }
 0x7a7   :  { %v1846_v49 = vpop.eup %1845 }
 0x7a8   :  { %767 = vrot.lane.b32.xlu0 %v1846_v49, %s1922_s26 }
 0x81a   :  { %v768_v50 = vpop.permute.xlu0 %767 }
 0x81b   :  { %v770_v51 = vmul.f32 %v1844_v40, %v768_v50 }
 0x81d   :  { %772 = vrot.lane.b32.xlu1 %v770_v51, %s1923_s8 }
 0x88f   :  { %v773_v52 = vpop.permute.xlu1 %772 }
 0x890   :  { %1694 = vmatmul.mubr.msk.f32.vlgmr.msra.gmra.mrb[6].mxu1 %vm469_vm2, %v773_v52 }
 0x891   :  { %1794 = vmatpush3.bf16.msra.mxu1 %v2067_v0  ;;  %1715 = vmatprep.mubr.msk.f32.mxu1 %vm1920_vm0, %v1919_v2 }
 0x892   :  { %1795 = vmatprep.subr.bf16.mxu1 %v1921_v4 }
 0x895   :  { %1797 = vmatpush3.bf16.msra.mxu1 %v2083_v11 }
 0x896   :  { %1804 = vmatprep.subr.bf16.mxu1 %v1921_v4 }
 0x963   :  { %v842_v53 = vpop.f32.mrb[6].mxu1 }
 0x964   :  { %v846_v54 = vadd.f32 %v842_v53, %v354_v55  ;;  %v1695_v56 = vpop.f32.mrb[7].mxu1 }
 0x965   :  { %v369_v56 = vadd.f32 %v2107_v18, %v2292_v31 }
 0x966   :  { %v1545_v57 = vmul.f32 -1.442695, %v846_v54 }
 0x968   :  { %1847 = vpow2.f32 %v1545_v57 }
 0x972   :  { %v1848_v58 = vpop.eup %1847 }
 0x973   :  { %v850_v59 = vadd.f32 1.0, %v1848_v58 }
 0x975   :  { %1849 = vrcp.f32 %v850_v59 }
 0x97f   :  { %v1850_v60 = vpop.eup %1849 }
 0x980   :  { %v853_v61 = vmul.f32 2.0, %v1850_v60  ;;  %v855_v3 = vmul.f32 %v1850_v60, %v764_v47 }
 0x982   :  { %v1546_v62 = vadd.f32 -1.0, %v853_v61 }
 0x984   :  { %857 = vrot.lane.b32.xlu0 %v1546_v62, %s1922_s26 }
 0x9f6   :  { %v858_v63 = vpop.permute.xlu0 %857 }
 0x9f7   :  { %v860_v1 = vmul.f32 %v1850_v60, %v858_v63 }
 0x9f9   :  { %862 = vrot.lane.b32.xlu1 %v860_v1, %s1922_s26 }
 0xa6b   :  { %v863_v6 = vpop.permute.xlu1 %862 }
 0xa6c   :  { %v865_v7 = vadd.f32 %v863_v6, %v855_v3 }
 0xa6e   :  { %1851 = vtanh.f32 %v865_v7 }
 0xa78   :  { %v1852_v8 = vpop.eup %1851 }
 0xa79   :  { %868 = vrot.lane.b32.xlu0 %v1852_v8, %s1922_s26 }
 0xaeb   :  { %v869_v9 = vpop.permute.xlu0 %868 }
 0xaec   :  { %v871_v10 = vmul.f32 %v1850_v60, %v869_v9 }
 0xaee   :  { %873 = vrot.lane.b32.xlu1 %v871_v10, %s1923_s8 }
 0xb60   :  { %v874_v12 = vpop.permute.xlu1 %873 }
 0xb61   :  { %1705 = vmatmul.mubr.msk.f32.vlgmr.msra.gmra.mrb[12].mxu0 %vm469_vm2, %v874_v12 }
 0xb62   :  { %1800 = vmatpush3.bf16.msra.mxu0 %v2067_v0  ;;  %1726 = vmatprep.mubr.msk.f32.mxu0 %vm1920_vm0, %v1919_v2 }
 0xb63   :  { %1801 = vmatprep.subr.bf16.mxu0 %v1921_v4 }
 0xb66   :  { %1803 = vmatpush3.bf16.msra.mxu0 %v2083_v11 }
 0xb67   :  { %1810 = vmatprep.subr.bf16.mxu0 %v1921_v4 }
 0xc34   :  { %v943_v19 = vpop.f32.mrb[12].mxu0 }
 0xc35   :  { %v947_v21 = vadd.f32 %v943_v19, %v359_v14  ;;  %v1706_v15 = vpop.f32.mrb[13].mxu0 }
 0xc37   :  { %v1548_v22 = vmul.f32 -1.442695, %v947_v21  ;;  %v374_v21 = vadd.f32 %v2290_v30, %v2107_v18 }
 0xc39   :  { %1853 = vpow2.f32 %v1548_v22 }
 0xc43   :  { %v1854_v23 = vpop.eup %1853 }
 0xc44   :  { %v951_v16 = vadd.f32 1.0, %v1854_v23 }
 0xc46   :  { %1855 = vrcp.f32 %v951_v16 }
 0xc50   :  { %v1856_v24 = vpop.eup %1855 }
 0xc51   :  { %v954_v17 = vmul.f32 2.0, %v1856_v24  ;;  %v956_v28 = vmul.f32 %v1856_v24, %v865_v7 }
 0xc53   :  { %v1549_v25 = vadd.f32 -1.0, %v954_v17 }
 0xc55   :  { %958 = vrot.lane.b32.xlu0 %v1549_v25, %s1922_s26 }
 0xcc7   :  { %v959_v26 = vpop.permute.xlu0 %958 }
 0xcc8   :  { %v961_v27 = vmul.f32 %v1856_v24, %v959_v26 }
 0xcca   :  { %963 = vrot.lane.b32.xlu1 %v961_v27, %s1922_s26 }
 0xd3c   :  { %v964_v32 = vpop.permute.xlu1 %963 }
 0xd3d   :  { %v966_v29 = vadd.f32 %v964_v32, %v956_v28 }
 0xd3f   :  { %1857 = vtanh.f32 %v966_v29 }
 0xd49   :  { %v1858_v33 = vpop.eup %1857 }
 0xd4a   :  { %969 = vrot.lane.b32.xlu0 %v1858_v33, %s1922_s26 }
 0xdbc   :  { %v970_v34 = vpop.permute.xlu0 %969 }
 0xdbd   :  { %v972_v35 = vmul.f32 %v1856_v24, %v970_v34  ;;  %v379_v34 = vadd.f32 %v2107_v18, %v2301_v48 }
 0xdbf   :  { %974 = vrot.lane.b32.xlu1 %v972_v35, %s1923_s8 }
 0xe31   :  { %v975_v36 = vpop.permute.xlu1 %974 }
 0xe32   :  { %1716 = vmatmul.mubr.msk.f32.vlgmr.msra.gmra.mrb[8].mxu1 %vm469_vm2, %v975_v36 }
 0xe33   :  { %1806 = vmatpush3.bf16.msra.mxu1 %v2067_v0  ;;  %1737 = vmatprep.mubr.msk.f32.mxu1 %vm1920_vm0, %v1919_v2 }
 0xe34   :  { %1807 = vmatprep.subr.bf16.mxu1 %v1921_v4 }
 0xe37   :  { %1809 = vmatpush3.bf16.msra.mxu1 %v2083_v11 }
 0xe38   :  { %1816 = vmatprep.subr.bf16.mxu1 %v1921_v4 }
 0xf05   :  { %v1044_v38 = vpop.f32.mrb[8].mxu1 }
 0xf06   :  { %v1048_v39 = vadd.f32 %v1044_v38, %v364_v37  ;;  %v1717_v40 = vpop.f32.mrb[9].mxu1 }
 0xf08   :  { %v1551_v41 = vmul.f32 -1.442695, %v1048_v39 }
 0xf0a   :  { %1859 = vpow2.f32 %v1551_v41 }
 0xf14   :  { %v1860_v42 = vpop.eup %1859 }
 0xf15   :  { %v1052_v43 = vadd.f32 1.0, %v1860_v42 }
 0xf17   :  { %1861 = vrcp.f32 %v1052_v43 }
 0xf21   :  { %v1862_v44 = vpop.eup %1861 }
 0xf22   :  { %v1055_v45 = vmul.f32 2.0, %v1862_v44  ;;  %v1057_v50 = vmul.f32 %v1862_v44, %v966_v29 }
 0xf24   :  { %v1552_v46 = vadd.f32 -1.0, %v1055_v45 }
 0xf26   :  { %1059 = vrot.lane.b32.xlu0 %v1552_v46, %s1922_s26 }
 0xf98   :  { %v1060_v47 = vpop.permute.xlu0 %1059 }
 0xf99   :  { %v1062_v49 = vmul.f32 %v1862_v44, %v1060_v47 }
 0xf9b   :  { %1064 = vrot.lane.b32.xlu1 %v1062_v49, %s1922_s26 }
0x100d   :  { %v1065_v51 = vpop.permute.xlu1 %1064 }
0x100e   :  { %v1067_v20 = vadd.f32 %v1065_v51, %v1057_v50 }
0x1010   :  { %1863 = vtanh.f32 %v1067_v20 }
0x101a   :  { %v1864_v52 = vpop.eup %1863 }
0x101b   :  { %1070 = vrot.lane.b32.xlu0 %v1864_v52, %s1922_s26  ;;  %v1534_v52 = vld [vmem:[%s2415_s9] ss:$0 sm:$0xff]  ;;  %s1924_s9 = smov 96  }
0x108d   :  { %v1071_v55 = vpop.permute.xlu0 %1070 }
0x108e   :  { %v1073_v53 = vmul.f32 %v1862_v44, %v1071_v55  ;;  %v462_v55 = vadd.f32 %v1534_v52, %v2102_v13 }
0x1090   :  { %1075 = vrot.lane.b32.xlu1 %v1073_v53, %s1923_s8  ;;  %v1565_v53 = vmul.f32 -1.442695, %v462_v55 }
0x1102   :  { %v1076_v54 = vpop.permute.xlu1 %1075 }
0x1103   :  { %1727 = vmatmul.mubr.msk.f32.vlgmr.msra.gmra.mrb[14].mxu0 %vm469_vm2, %v1076_v54  ;;  %v384_v54 = vadd.f32 %v2298_v5, %v2107_v18 }
0x1104   :  { %1812 = vmatpush3.bf16.msra.mxu0 %v2067_v0  ;;  %1748 = vmatprep.mubr.msk.f32.mxu0 %vm1920_vm0, %v1919_v2 }
0x1105   :  { %1813 = vmatprep.subr.bf16.mxu0 %v1921_v4 }
0x1108   :  { %1815 = vmatpush3.bf16.msra.mxu0 %v2083_v11 }
0x11d6   :  { %v1145_v57 = vpop.f32.mrb[14].mxu0 }
0x11d7   :  { %v1149_v58 = vadd.f32 %v1145_v57, %v369_v56  ;;  %v1728_v59 = vpop.f32.mrb[15].mxu0 }
0x11d9   :  { %v1554_v60 = vmul.f32 -1.442695, %v1149_v58 }
0x11db   :  { %1865 = vpow2.f32 %v1554_v60 }
0x11e5   :  { %v1866_v61 = vpop.eup %1865 }
0x11e6   :  { %v1153_v62 = vadd.f32 1.0, %v1866_v61 }
0x11e8   :  { %1867 = vrcp.f32 %v1153_v62 }
0x11f2   :  { %v1868_v63 = vpop.eup %1867 }
0x11f3   :  { %v1156_v1 = vmul.f32 2.0, %v1868_v63  ;;  %v1158_v8 = vmul.f32 %v1868_v63, %v1067_v20 }
0x11f5   :  { %v1555_v3 = vadd.f32 -1.0, %v1156_v1 }
0x11f7   :  { %1160 = vrot.lane.b32.xlu0 %v1555_v3, %s1922_s26 }
0x1269   :  { %v1161_v6 = vpop.permute.xlu0 %1160 }
0x126a   :  { %v1163_v7 = vmul.f32 %v1868_v63, %v1161_v6 }
0x126c   :  { %1165 = vrot.lane.b32.xlu1 %v1163_v7, %s1922_s26 }
0x12de   :  { %v1166_v9 = vpop.permute.xlu1 %1165 }
0x12df   :  { %v1168_v31 = vadd.f32 %v1166_v9, %v1158_v8 }
0x12e1   :  { %1869 = vtanh.f32 %v1168_v31 }
0x12eb   :  { %v1870_v10 = vpop.eup %1869 }
0x12ec   :  { %1171 = vrot.lane.b32.xlu0 %v1870_v10, %s1922_s26 }
0x135e   :  { %v1172_v12 = vpop.permute.xlu0 %1171 }
0x135f   :  { %v1174_v14 = vmul.f32 %v1868_v63, %v1172_v12 }
0x1361   :  { %1176 = vrot.lane.b32.xlu1 %v1174_v14, %s1923_s8 }
0x13d3   :  { %v1177_v19 = vpop.permute.xlu1 %1176 }
0x13d4   :  { %1738 = vmatmul.mubr.msk.f32.vlgmr.msra.gmra.mrb[10].mxu1 %vm469_vm2, %v1177_v19 }
0x13d5   :  { %1818 = vmatpush3.bf16.msra.mxu1 %v2067_v0  ;;  %1759 = vmatprep.mubr.msk.f32.mxu1 %vm1920_vm0, %v1919_v2 }
0x13d6   :  { %1819 = vmatprep.subr.bf16.mxu1 %v1921_v4 }
0x13d9   :  { %1821 = vmatpush3.bf16.msra.mxu1 %v2083_v11 }
0x14a7   :  { %v1246_v15 = vpop.f32.mrb[10].mxu1 }
0x14a8   :  { %v1250_v22 = vadd.f32 %v1246_v15, %v374_v21  ;;  %v1739_v23 = vpop.f32.mrb[11].mxu1 }
0x14aa   :  { %v1557_v16 = vmul.f32 -1.442695, %v1250_v22 }
0x14ac   :  { %1871 = vpow2.f32 %v1557_v16 }
0x14b6   :  { %v1872_v24 = vpop.eup %1871 }
0x14b7   :  { %v1254_v17 = vadd.f32 1.0, %v1872_v24 }
0x14b9   :  { %1873 = vrcp.f32 %v1254_v17 }
0x14c3   :  { %v1874_v25 = vpop.eup %1873 }
0x14c4   :  { %v1257_v0 = vmul.f32 2.0, %v1874_v25  ;;  %v1259_v11 = vmul.f32 %v1874_v25, %v1168_v31 }
0x14c6   :  { %v1558_v26 = vadd.f32 -1.0, %v1257_v0 }
0x14c8   :  { %1261 = vrot.lane.b32.xlu0 %v1558_v26, %s1922_s26 }
0x153a   :  { %v1262_v2 = vpop.permute.xlu0 %1261 }
0x153b   :  { %v1264_v4 = vmul.f32 %v1874_v25, %v1262_v2 }
0x153d   :  { %1266 = vrot.lane.b32.xlu1 %v1264_v4, %s1922_s26 }
0x15af   :  { %v1267_v27 = vpop.permute.xlu1 %1266 }
0x15b0   :  { %v1269_v30 = vadd.f32 %v1267_v27, %v1259_v11 }
0x15b2   :  { %1875 = vtanh.f32 %v1269_v30 }
0x15bc   :  { %v1876_v28 = vpop.eup %1875 }
0x15bd   :  { %1272 = vrot.lane.b32.xlu0 %v1876_v28, %s1922_s26 }
0x162f   :  { %v1273_v32 = vpop.permute.xlu0 %1272 }
0x1630   :  { %v1275_v29 = vmul.f32 %v1874_v25, %v1273_v32 }
0x1632   :  { %1277 = vrot.lane.b32.xlu1 %v1275_v29, %s1923_s8 }
0x16a4   :  { %v1278_v33 = vpop.permute.xlu1 %1277 }
0x16a5   :  { %1749 = vmatmul.mubr.msk.f32.vlgmr.msra.gmra.mrb[16].mxu0 %vm469_vm2, %v1278_v33 }
0x1778   :  { %v1347_v35 = vpop.f32.mrb[16].mxu0 }
0x1779   :  { %v1351_v36 = vadd.f32 %v1347_v35, %v379_v34  ;;  %v1750_v37 = vpop.f32.mrb[17].mxu0 }
0x177b   :  { %v1560_v38 = vmul.f32 -1.442695, %v1351_v36 }
0x177d   :  { %1877 = vpow2.f32 %v1560_v38 }
0x1787   :  { %v1878_v39 = vpop.eup %1877 }
0x1788   :  { %v1355_v40 = vadd.f32 1.0, %v1878_v39 }
0x178a   :  { %1879 = vrcp.f32 %v1355_v40 }
0x1794   :  { %v1880_v41 = vpop.eup %1879 }
0x1795   :  { %v1358_v42 = vmul.f32 2.0, %v1880_v41  ;;  %v1360_v46 = vmul.f32 %v1880_v41, %v1269_v30 }
0x1797   :  { %v1561_v43 = vadd.f32 -1.0, %v1358_v42 }
0x1799   :  { %1362 = vrot.lane.b32.xlu0 %v1561_v43, %s1922_s26 }
0x180b   :  { %v1363_v44 = vpop.permute.xlu0 %1362 }
0x180c   :  { %v1365_v45 = vmul.f32 %v1880_v41, %v1363_v44 }
0x180e   :  { %1367 = vrot.lane.b32.xlu1 %v1365_v45, %s1922_s26 }
0x1880   :  { %v1368_v47 = vpop.permute.xlu1 %1367 }
0x1881   :  { %v1370_v48 = vadd.f32 %v1368_v47, %v1360_v46 }
0x1883   :  { %1881 = vtanh.f32 %v1370_v48 }
0x1884   :  { %1883 = vpow2.f32 %v1565_v53 }
0x188d   :  { %v1882_v49 = vpop.eup %1881 }
0x188e   :  { %1373 = vrot.lane.b32.xlu0 %v1882_v49, %s1922_s26  ;;  %v1884_v60 = vpop.eup %1883 }
0x188f   :  { %v1481_v61 = vadd.f32 1.0, %v1884_v60 }
0x1900   :  { %v1374_v50 = vpop.permute.xlu0 %1373 }
0x1901   :  { %v1376_v51 = vmul.f32 %v1880_v41, %v1374_v50 }
0x1903   :  { %1378 = vrot.lane.b32.xlu1 %v1376_v51, %s1923_s8 }
0x1975   :  { %v1379_v20 = vpop.permute.xlu1 %1378 }
0x1976   :  { %1760 = vmatmul.mubr.msk.f32.vlgmr.msra.gmra.mrb[12].mxu1 %vm469_vm2, %v1379_v20 }
0x1a49   :  { %v1448_v56 = vpop.f32.mrb[12].mxu1 }
0x1a4a   :  { %v1452_v57 = vadd.f32 %v1448_v56, %v384_v54  ;;  %v1761_v58 = vpop.f32.mrb[13].mxu1 }
0x1a4c   :  { %v1563_v59 = vmul.f32 -1.442695, %v1452_v57 }
0x1a4e   :  { %1885 = vpow2.f32 %v1563_v59 }
0x1a4f   :  { %1887 = vrcp.f32 %v1481_v61 }
0x1a58   :  { %v1886_v62 = vpop.eup %1885 }
0x1a59   :  { %v1456_v63 = vadd.f32 1.0, %v1886_v62  ;;  %v1888_v1 = vpop.eup %1887 }
0x1a5a   :  { %v1484_v7 = vmul.f32 2.0, %v1888_v1 }
0x1a5b   :  { %1889 = vrcp.f32 %v1456_v63 }
0x1a5c   :  { %v1566_v18 = vadd.f32 -1.0, %v1484_v7 }
0x1a65   :  { %v1890_v3 = vpop.eup %1889 }
0x1a66   :  { %v1459_v6 = vmul.f32 2.0, %v1890_v3  ;;  %v1461_v12 = vmul.f32 %v1890_v3, %v1370_v48 }
0x1a68   :  { %v1564_v13 = vadd.f32 -1.0, %v1459_v6 }
0x1a6a   :  { %1463 = vrot.lane.b32.xlu0 %v1564_v13, %s1922_s26 }
0x1a6e   :  { %1487 = vrot.lane.b32.xlu0 %v1566_v18, %s1922_s26 }
0x1adc   :  { %v1464_v5 = vpop.permute.xlu0 %1463 }
0x1add   :  { %v1466_v8 = vmul.f32 %v1890_v3, %v1464_v5 }
0x1adf   :  { %1468 = vrot.lane.b32.xlu1 %v1466_v8, %s1922_s26 }
0x1ae0   :  { %v1488_v9 = vpop.permute.xlu0 %1487 }
0x1ae1   :  { %v1490_v31 = vmul.f32 %v1888_v1, %v1488_v9 }
0x1ae3   :  { %1891 = vtanh.f32 %v1490_v31 }
0x1aed   :  { %v1892_v10 = vpop.eup %1891 }
0x1aee   :  { %1493 = vrot.lane.b32.xlu0 %v1892_v10, %s1923_s8 }
0x1b51   :  { %v1469_v14 = vpop.permute.xlu1 %1468 }
0x1b52   :  { %v1471_v19 = vadd.f32 %v1469_v14, %v1461_v12 }
0x1b54   :  { %1893 = vtanh.f32 %v1471_v19 }
0x1b5e   :  { %v1894_v21 = vpop.eup %1893 }
0x1b5f   :  { %1474 = vrot.lane.b32.xlu1 %v1894_v21, %s1922_s26 }
0x1b60   :  { %v1494_v15 = vpop.permute.xlu0 %1493 }
0x1b61   :  { %v1496_v22 = vmul.f32 %v1888_v1, %v1494_v15 }
0x1b63   :  { %1502 = vrot.lane.b32.xlu0 %v1496_v22, %s1924_s9 }
0x1bd1   :  { %v1475_v23 = vpop.permute.xlu1 %1474 }
0x1bd2   :  { %v1477_v16 = vmul.f32 %v1890_v3, %v1475_v23 }
0x1bd4   :  { %1498 = vrot.lane.b32.xlu1 %v1477_v16, %s1923_s8 }
0x1bd5   :  { %v1503_v24 = vpop.permute.xlu0 %1502 }
0x1c46   :  { %v1499_v17 = vpop.permute.xlu1 %1498 }
0x1c47   :  { %v1505_v25 = vsel %vm469_vm2, %v1499_v17, %v1503_v24 }
0x1c48   :  { %v1507_v0 = vsel %vm1506_vm3, %v1505_v25, 0.0 }
0x1c49   :  { %1508 = vst [vmem:[#allocation2] sm:$0xff] %v1507_v0 }
0x1c4a   :  { %1906 = shalt.err (!%p1903_p4)
}
0x1c4b   :  { %s1907_s8 = scalar_lea.hbm %s2416_s10, 128 }
0x1c4c   :  { %p1908_p5 = scmp.ne.s32.totalorder %s2416_s10, %s1907_s8  ;;  %p1911_p6 = scmp.lt.u32.totalorder %s1907_s8, %s2416_s10 }
0x1c4e   :  { %p1913_p7 = pnand %p1911_p6, %p1908_p5 }
0x1c50   :  { %1916 = shalt.err (!%p1913_p7)
}
0x1c51   :  { %1518 = dma.vmem_to_hbm [thread:$0]  %s1516_s16, 128, %s2416_s10, [#allocation3]  }
0x1c52   :  { %1917 = dma.done.wait [#allocation3], 128  }
0x1c53   :  { %1918 = vsyncadd [#allocation3], 4294967168 }
0x1c54   :  { %1522 = vsyncpa [#allocation3], 1 }

</bundles_post_ra>
